<compile_context>
chip_gen: v7x
topology: tpu7x:2x2x1
jax: 0.10.0
libtpu: 0.0.40
codegen_flags: <defaults>
</compile_context>

<pallas_src>
import functools

import jax
import jax.numpy as jnp
from jax.experimental import pallas as pl
from jax.experimental.pallas import tpu as pltpu


# --------------------------------- kernel -----------------------------------
def _gat_fused_kernel(x_ref, adj_ref, w1_ref, w2_ref, out_ref, *,
                      nheads, nhid, nclass, alpha, mm_dtype, approx_recip):
    """Fused 2-layer GAT forward for a block of `bt` graphs.

    x_ref:   (bt, N, Fin)          node features
    adj_ref: (bt, N, N)            dense adjacency (0/1)
    w1_ref:  (Fin, H*nhid + 2*H)   [W_0..W_{H-1} | W_h@a1_h ... | W_h@a2_h ...]
    w2_ref:  (H*nhid, Cpad)        [Wo | Wo@ao1 | Wo@ao2 | zero pad to 128*k]
    out_ref: (bt, N, Cpad)         softmax(elu(out_att(...)), node axis), padded
    """
    bt, n, fin = x_ref.shape
    hh = nheads * nhid
    cpad = out_ref.shape[-1]

    adj_mask = adj_ref[...] > 0.0
    ones = jnp.ones((bt, n, 1), jnp.float32)   # hoisted (reused by every head)

    def graph_attention(f1, f2, values):
        # e[b,i,j] = leakyrelu(f1[b,i] + f2[b,j]).  Built with one tiny batched
        # MXU matmul ([f1|1] x [1|f2]^T) instead of a sublane->lane transpose.
        lhs = jnp.concatenate([f1, ones], axis=-1).astype(mm_dtype)   # (bt,n,2)
        rhs = jnp.concatenate([ones, f2], axis=-1).astype(mm_dtype)   # (bt,n,2)
        e = jnp.einsum('bik,bjk->bij', lhs, rhs,
                       preferred_element_type=jnp.float32)            # (bt,n,n)
        e = jnp.where(e > 0.0, e, alpha * e)                          # LeakyReLU
        e = jnp.where(adj_mask, e, -9e15)                             # mask non-edges
        e = e - jnp.max(e, axis=-1, keepdims=True)                    # lane-axis softmax
        p = jnp.exp(e)
        inv = pl.reciprocal(jnp.sum(p, axis=-1, keepdims=True),
                            approx=approx_recip)                      # EUP slot
        attn = p * inv
        # TODO(synk): attention dropout (training mode) omitted — eval identity.
        return jnp.einsum('bij,bjk->bik', attn.astype(mm_dtype),
                          values.astype(mm_dtype),
                          preferred_element_type=jnp.float32)

    # ---- hidden layer: all heads share one folded projection matmul --------
    proj1 = jnp.dot(x_ref[...].reshape(bt * n, fin).astype(mm_dtype),
                    w1_ref[...].astype(mm_dtype),
                    preferred_element_type=jnp.float32)
    proj1 = proj1.reshape(bt, n, hh + 2 * nheads)

    head_outs = []
    for h in range(nheads):
        wh = proj1[:, :, h * nhid:(h + 1) * nhid]                 # (bt,n,nhid)
        f1 = proj1[:, :, hh + h:hh + h + 1]                       # (bt,n,1)
        f2 = proj1[:, :, hh + nheads + h:hh + nheads + h + 1]     # (bt,n,1)
        hp = graph_attention(f1, f2, wh)
        hp = jnp.where(hp > 0.0, hp, jnp.exp(hp) - 1.0)           # F.elu (hidden heads)
        head_outs.append(hp)
    hcat = jnp.concatenate(head_outs, axis=-1)                    # (bt,n,H*nhid)

    # ---- output attention layer (folded + lane-padded to Cpad) -------------
    proj2 = jnp.dot(hcat.reshape(bt * n, hh).astype(mm_dtype),
                    w2_ref[...].astype(mm_dtype),
                    preferred_element_type=jnp.float32)
    proj2 = proj2.reshape(bt, n, cpad)
    f1o = proj2[:, :, nclass:nclass + 1]
    f2o = proj2[:, :, nclass + 1:nclass + 2]
    # Use the full padded proj2 as the value matrix: the MXU is 128 lanes wide
    # anyway; the extra columns are zeros / garbage that the wrapper slices off.
    hp2 = graph_attention(f1o, f2o, proj2)                        # (bt,n,cpad)
    hp2 = jnp.where(hp2 > 0.0, hp2, jnp.exp(hp2) - 1.0)           # F.elu

    # Final softmax over the node axis (dim=1).  Sublane-axis reduction (XLU),
    # cheap at small N.  TODO(synk): for large N make the softmax axis the lane
    # axis (transpose) or fold it into the wrapper.
    hp2 = hp2 - jnp.max(hp2, axis=1, keepdims=True)
    ep = jnp.exp(hp2)
    inv = pl.reciprocal(jnp.sum(ep, axis=1, keepdims=True), approx=approx_recip)
    out_ref[...] = (ep * inv).astype(out_ref.dtype)


# -------------------------------- wrapper ------------------------------------
def _pick_batch_block(batch, n_nodes, target_rows=128):
    """Graphs per grid step: fill the MXU M-dim (>= target_rows rows) while
    keeping >= 2 grid steps so both v7x TensorCores get work."""
    bt = max(1, min(batch, target_rows // max(n_nodes, 1)))
    while bt > 1 and batch % bt:
        bt -= 1
    if batch // bt < 2:
        smaller = [d for d in range(1, bt) if batch % d == 0 and batch // d >= 2]
        if smaller:
            bt = max(smaller)
    return bt


def gat_forward(x, adj, params, *, alpha, mm_dtype=jnp.bfloat16,
                approx_recip=True, batch_block=None):
    """GAT.forward (eval mode) as one fused Pallas kernel over batched graphs."""
    B, N, Fin = x.shape
    Ws = [W for (W, _) in params["attentions"]]
    As = [a for (_, a) in params["attentions"]]
    H = len(Ws)
    nhid = Ws[0].shape[1]
    Wo, ao = params["out_att"]
    nclass = Wo.shape[1]

    # Fold attention vectors into the projections (outside the kernel, once).
    w1 = jnp.concatenate(
        Ws
        + [W @ a[:nhid] for W, a in zip(Ws, As)]
        + [W @ a[nhid:] for W, a in zip(Ws, As)],
        axis=1).astype(jnp.float32)                       # (Fin, H*nhid + 2H)

    cpad = ((nclass + 2 + 127) // 128) * 128              # lane-dense output width
    w2 = jnp.zeros((H * nhid, cpad), jnp.float32)
    w2 = w2.at[:, :nclass].set(Wo)
    w2 = w2.at[:, nclass:nclass + 1].set(Wo @ ao[:nclass])
    w2 = w2.at[:, nclass + 1:nclass + 2].set(Wo @ ao[nclass:])

    bt = batch_block or _pick_batch_block(B, N)
    assert B % bt == 0
    k1 = H * (nhid + 2)

    kernel = functools.partial(
        _gat_fused_kernel, nheads=H, nhid=nhid, nclass=nclass,
        alpha=float(alpha), mm_dtype=mm_dtype, approx_recip=approx_recip)

    flops = 2 * B * N * (Fin * k1 + H * N * (nhid + 2)
                         + H * nhid * cpad + N * (cpad + 2))
    transcendentals = B * N * (H * (N + nhid) + N + 2 * cpad)
    bytes_accessed = 4 * (x.size + adj.size + w1.size + w2.size + B * N * cpad)

    out = pl.pallas_call(
        kernel,
        out_shape=jax.ShapeDtypeStruct((B, N, cpad), jnp.float32),
        grid_spec=pltpu.PrefetchScalarGridSpec(
            num_scalar_prefetch=0,
            grid=(B // bt,),
            in_specs=[
                pl.BlockSpec((bt, N, Fin), lambda b: (b, 0, 0)),
                pl.BlockSpec((bt, N, N), lambda b: (b, 0, 0)),
                pl.BlockSpec((Fin, k1), lambda b: (0, 0)),
                pl.BlockSpec((H * nhid, cpad), lambda b: (0, 0)),
            ],
            out_specs=pl.BlockSpec((bt, N, cpad), lambda b: (b, 0, 0)),
        ),
        compiler_params=pltpu.CompilerParams(
            dimension_semantics=("parallel",)),
        cost_estimate=pl.CostEstimate(flops=flops,
                                      transcendentals=transcendentals,
                                      bytes_accessed=bytes_accessed),
        # TODO(synk): for large N (>~2k on v7x / 64 MiB VMEM) tile the attention
        # over query-node rows with an online (flash-style) softmax instead of
        # materialising the full (N, N) logits block in VMEM.
    )(x, adj, w1, w2)

    out = out[:, :, :nclass]                              # drop lane padding
    s = int(round(N ** 0.5))
    return out.reshape(B, s, s, nclass)


# ----------------------------- parameter init --------------------------------
def _xavier_uniform(key, shape, gain=1.414):
    fan_in, fan_out = shape[0], shape[1]
    limit = gain * (6.0 / (fan_in + fan_out)) ** 0.5
    return jax.random.uniform(key, shape, jnp.float32, -limit, limit)


def init_gat_params(key, nfeat, nhid, nclass, nheads):
    params = {"attentions": [], "out_att": None}
    for _ in range(nheads):
        key, k1, k2 = jax.random.split(key, 3)
        W = _xavier_uniform(k1, (nfeat, nhid))
        a = _xavier_uniform(k2, (2 * nhid, 1))
        params["attentions"].append((W, a))
    key, k1, k2 = jax.random.split(key, 3)
    Wo = _xavier_uniform(k1, (nhid * nheads, nclass))
    ao = _xavier_uniform(k2, (2 * nclass, 1))
    params["out_att"] = (Wo, ao)
    return params


# ------------------------------ references -----------------------------------
def _ref_forward(x, adj, params, alpha):
    """Pure-JAX float32 reference with the exact PyTorch GAT semantics."""
    def layer(xin, W, a, concat):
        fout = W.shape[1]
        wh = jnp.einsum('bnf,fk->bnk', xin, W)
        f1 = jnp.einsum('bnk,ko->bno', wh, a[:fout])
        f2 = jnp.einsum('bnk,ko->bno', wh, a[fout:])
        e = f1 + jnp.swapaxes(f2, 1, 2)
        e = jnp.where(e > 0, e, alpha * e)
        e = jnp.where(adj > 0, e, -9e15)
        attn = jax.nn.softmax(e, axis=2)
        hp = jnp.einsum('bij,bjk->bik', attn, wh)
        return jnp.where(hp > 0, hp, jnp.exp(hp) - 1.0) if concat else hp

    heads = [layer(x, W, a, True) for (W, a) in params["attentions"]]
    h = jnp.concatenate(heads, axis=2)
    Wo, ao = params["out_att"]
    out = layer(h, Wo, ao, False)
    out = jnp.where(out > 0, out, jnp.exp(out) - 1.0)      # F.elu
    out = jax.nn.softmax(out, axis=1)                      # F.softmax(dim=1)
    B, N, C = out.shape
    s = int(round(N ** 0.5))
    return out.reshape(B, s, s, C)


def _mimic_forward(x, adj, params, alpha, mm_dtype=jnp.bfloat16):
    """Pure-JAX model of exactly what the kernel computes: folded attention
    vectors and every MXU operand rounded to mm_dtype (f32 accumulation)."""
    def rnd(v):
        return v.astype(mm_dtype).astype(jnp.float32)

    def layer(xin, W, a, concat):
        fout = W.shape[1]
        xr = xin.astype(mm_dtype)
        wh = jnp.einsum('bnf,fk->bnk', xr, W.astype(mm_dtype),
                        preferred_element_type=jnp.float32)
        f1 = rnd(jnp.einsum('bnf,fk->bnk', xr, (W @ a[:fout]).astype(mm_dtype),
                            preferred_element_type=jnp.float32))
        f2 = rnd(jnp.einsum('bnf,fk->bnk', xr, (W @ a[fout:]).astype(mm_dtype),
                            preferred_element_type=jnp.float32))
        e = f1 + jnp.swapaxes(f2, 1, 2)
        e = jnp.where(e > 0, e, alpha * e)
        e = jnp.where(adj > 0, e, -9e15)
        e = e - jnp.max(e, axis=-1, keepdims=True)
        p = jnp.exp(e)
        attn = p / jnp.sum(p, axis=-1, keepdims=True)
        hp = jnp.einsum('bij,bjk->bik', attn.astype(mm_dtype),
                        wh.astype(mm_dtype), preferred_element_type=jnp.float32)
        return jnp.where(hp > 0, hp, jnp.exp(hp) - 1.0) if concat else hp

    heads = [layer(x, W, a, True) for (W, a) in params["attentions"]]
    h = jnp.concatenate(heads, axis=2)
    Wo, ao = params["out_att"]
    out = layer(h, Wo, ao, False)
    out = jnp.where(out > 0, out, jnp.exp(out) - 1.0)
    out = out - jnp.max(out, axis=1, keepdims=True)
    ep = jnp.exp(out)
    out = ep / jnp.sum(ep, axis=1, keepdims=True)
    B, N, C = out.shape
    s = int(round(N ** 0.5))
    return out.reshape(B, s, s, C)


# ----------------------------------- main -------------------------------------
if __name__ == "__main__":
    B, N = 8, 16                      # N must be a perfect square (view -> 4x4)
    nfeat, nhid, nclass, nheads = 8, 8, 4, 2
    alpha = 0.2

    key = jax.random.PRNGKey(0)
    key, kx, ka, kp = jax.random.split(key, 4)

    x = jax.random.normal(kx, (B, N, nfeat), jnp.float32)
    # random binary adjacency with self loops
    adj = (jax.random.uniform(ka, (B, N, N)) > 0.6).astype(jnp.float32)
    eye = jnp.broadcast_to(jnp.eye(N, dtype=jnp.float32), (B, N, N))
    adj = jnp.maximum(adj, eye)

    params = init_gat_params(kp, nfeat, nhid, nclass, nheads)

    out = gat_forward(x, adj, params, alpha=alpha)
    out = jax.block_until_ready(out)
    assert out.shape == (B, 4, 4, nclass), out.shape

    # Tight check against a pure-JAX model of the kernel's exact math
    # (folded weights, bf16 MXU operands); slack covers the approx reciprocal.
    mimic = _mimic_forward(x, adj, params, alpha, mm_dtype=jnp.bfloat16)
    assert jnp.allclose(out, mimic, rtol=2e-2, atol=1e-2), \
        float(jnp.max(jnp.abs(out - mimic)))

    # Loose semantics check against the float32 PyTorch-style reference;
    # tolerance sized for bf16 MXU operands + approx reciprocal.
    spec = _ref_forward(x, adj, params, alpha)
    assert float(jnp.max(jnp.abs(out - spec))) < 0.1, \
        float(jnp.max(jnp.abs(out - spec)))

    print("KERNEL_OK")
</pallas_src>

<mosaic_0001>
module attributes {stable_mosaic.version = 11 : i64} {
  func.func @_gat_fused_kernel(%arg0: i32, %arg1: memref<4x16x8xf32, #tpu.memory_space<vmem>>, %arg2: memref<4x16x16xf32, #tpu.memory_space<vmem>>, %arg3: memref<8x20xf32, #tpu.memory_space<vmem>>, %arg4: memref<16x128xf32, #tpu.memory_space<vmem>>, %arg5: memref<4x16x128xf32, #tpu.memory_space<vmem>>) attributes {dimension_semantics = [#tpu.dimension_semantics<parallel>], iteration_bounds = array<i64: 2>, scalar_prefetch = 0 : i64, scratch_operands = 0 : i64, tpu.core_type = #tpu.core_type<tc>, window_params = [{transform_indices = @transform_0, window_bounds = array<i64: 4, 16, 8>}, {transform_indices = @transform_1, window_bounds = array<i64: 4, 16, 16>}, {pipeline_mode = #tpu.pipeline_mode<synchronous>, transform_indices = @transform_2, window_bounds = array<i64: 8, 20>}, {pipeline_mode = #tpu.pipeline_mode<synchronous>, transform_indices = @transform_3, window_bounds = array<i64: 16, 128>}, {transform_indices = @transform_4, window_bounds = array<i64: 4, 16, 128>}]} {
    %c0 = arith.constant 0 : index
    %c0_0 = arith.constant 0 : index
    %c0_1 = arith.constant 0 : index
    %0 = vector.load %arg2[%c0, %c0_0, %c0_1] : memref<4x16x16xf32, #tpu.memory_space<vmem>>, vector<4x16x16xf32>
    %cst = arith.constant 0.000000e+00 : f32
    %1 = vector.broadcast %cst : f32 to vector<4x16x16xf32>
    %2 = arith.cmpf ogt, %0, %1 : vector<4x16x16xf32>
    %cst_2 = arith.constant 1.000000e+00 : f32
    %3 = vector.broadcast %cst_2 : f32 to vector<4x16x1xf32>
    %c0_3 = arith.constant 0 : index
    %c0_4 = arith.constant 0 : index
    %c0_5 = arith.constant 0 : index
    %4 = vector.load %arg1[%c0_3, %c0_4, %c0_5] : memref<4x16x8xf32, #tpu.memory_space<vmem>>, vector<4x16x8xf32>
    %5 = vector.shape_cast %4 : vector<4x16x8xf32> to vector<64x8xf32>
    %6 = arith.truncf %5 : vector<64x8xf32> to vector<64x8xbf16>
    %c0_6 = arith.constant 0 : index
    %c0_7 = arith.constant 0 : index
    %7 = vector.load %arg3[%c0_6, %c0_7] : memref<8x20xf32, #tpu.memory_space<vmem>>, vector<8x20xf32>
    %8 = arith.truncf %7 : vector<8x20xf32> to vector<8x20xbf16>
    %cst_8 = arith.constant dense<0.000000e+00> : vector<64x20xf32>
    %9 = tpu.matmul %6, %8, %cst_8 {dimension_numbers = #tpu.dot_dimension_numbers<[1], [0], [0], [1], [0, 0, 1, 1], [], []>} : vector<64x8xbf16>, vector<8x20xbf16>, vector<64x20xf32> -> vector<64x20xf32>
    %10 = vector.shape_cast %9 : vector<64x20xf32> to vector<4x16x20xf32>
    %11 = vector.extract_strided_slice %10 {offsets = [0, 0, 0], sizes = [4, 16, 8], strides = [1, 1, 1]} : vector<4x16x20xf32> to vector<4x16x8xf32>
    %12 = vector.extract_strided_slice %10 {offsets = [0, 0, 16], sizes = [4, 16, 1], strides = [1, 1, 1]} : vector<4x16x20xf32> to vector<4x16x1xf32>
    %13 = vector.extract_strided_slice %10 {offsets = [0, 0, 18], sizes = [4, 16, 1], strides = [1, 1, 1]} : vector<4x16x20xf32> to vector<4x16x1xf32>
    %14 = tpu.concatenate %12, %3 in 2 : vector<4x16x1xf32>, vector<4x16x1xf32> -> vector<4x16x2xf32>
    %15 = arith.truncf %14 : vector<4x16x2xf32> to vector<4x16x2xbf16>
    %16 = tpu.concatenate %3, %13 in 2 : vector<4x16x1xf32>, vector<4x16x1xf32> -> vector<4x16x2xf32>
    %17 = arith.truncf %16 : vector<4x16x2xf32> to vector<4x16x2xbf16>
    "tpu.trace_start"() <{level = 10 : i32, message = "bik,bjk->bij"}> : () -> ()
    %cst_9 = arith.constant dense<0.000000e+00> : vector<4x16x16xf32>
    %18 = tpu.matmul %15, %17, %cst_9 {dimension_numbers = #tpu.dot_dimension_numbers<[2], [2], [1], [1], [0, 0, 0, 1, 1, 1], [0], [0]>} : vector<4x16x2xbf16>, vector<4x16x2xbf16>, vector<4x16x16xf32> -> vector<4x16x16xf32>
    %cst_10 = arith.constant 0.000000e+00 : f32
    "tpu.trace_stop"() : () -> ()
    %19 = vector.broadcast %cst_10 : f32 to vector<4x16x16xf32>
    %20 = arith.cmpf ogt, %18, %19 : vector<4x16x16xf32>
    %cst_11 = arith.constant 2.000000e-01 : f32
    %21 = vector.broadcast %cst_11 : f32 to vector<4x16x16xf32>
    %22 = arith.mulf %21, %18 : vector<4x16x16xf32>
    %23 = arith.select %20, %18, %22 : vector<4x16x16xi1>, vector<4x16x16xf32>
    %cst_12 = arith.constant -9.000000e+15 : f32
    %24 = vector.broadcast %cst_12 : f32 to vector<4x16x16xf32>
    %25 = arith.select %2, %23, %24 : vector<4x16x16xi1>, vector<4x16x16xf32>
    %cst_13 = arith.constant dense<0xFF800000> : vector<4x16xf32>
    %26 = vector.multi_reduction <maximumf>, %25, %cst_13 [2] : vector<4x16x16xf32> to vector<4x16xf32>
    %27 = vector.shape_cast %26 : vector<4x16xf32> to vector<4x16x1xf32>
    %28 = vector.broadcast %27 : vector<4x16x1xf32> to vector<4x16x16xf32>
    %29 = arith.subf %25, %28 : vector<4x16x16xf32>
    %30 = math.exp %29 : vector<4x16x16xf32>
    %cst_14 = arith.constant dense<0.000000e+00> : vector<4x16xf32>
    %31 = vector.multi_reduction <add>, %30, %cst_14 [2] : vector<4x16x16xf32> to vector<4x16xf32>
    %32 = vector.shape_cast %31 : vector<4x16xf32> to vector<4x16x1xf32>
    %33 = tpu.reciprocal %32 {approx = true} : vector<4x16x1xf32> -> vector<4x16x1xf32>
    %34 = vector.broadcast %33 : vector<4x16x1xf32> to vector<4x16x16xf32>
    %35 = arith.mulf %30, %34 : vector<4x16x16xf32>
    %36 = arith.truncf %35 : vector<4x16x16xf32> to vector<4x16x16xbf16>
    %37 = arith.truncf %11 : vector<4x16x8xf32> to vector<4x16x8xbf16>
    "tpu.trace_start"() <{level = 10 : i32, message = "bij,bjk->bik"}> : () -> ()
    %cst_15 = arith.constant dense<0.000000e+00> : vector<4x16x8xf32>
    %38 = tpu.matmul %36, %37, %cst_15 {dimension_numbers = #tpu.dot_dimension_numbers<[2], [1], [1], [2], [0, 0, 0, 1, 1, 2], [0], [0]>} : vector<4x16x16xbf16>, vector<4x16x8xbf16>, vector<4x16x8xf32> -> vector<4x16x8xf32>
    %cst_16 = arith.constant 0.000000e+00 : f32
    "tpu.trace_stop"() : () -> ()
    %39 = vector.broadcast %cst_16 : f32 to vector<4x16x8xf32>
    %40 = arith.cmpf ogt, %38, %39 : vector<4x16x8xf32>
    %41 = math.exp %38 : vector<4x16x8xf32>
    %cst_17 = arith.constant 1.000000e+00 : f32
    %42 = vector.broadcast %cst_17 : f32 to vector<4x16x8xf32>
    %43 = arith.subf %41, %42 : vector<4x16x8xf32>
    %44 = arith.select %40, %38, %43 : vector<4x16x8xi1>, vector<4x16x8xf32>
    %45 = vector.extract_strided_slice %10 {offsets = [0, 0, 8], sizes = [4, 16, 8], strides = [1, 1, 1]} : vector<4x16x20xf32> to vector<4x16x8xf32>
    %46 = vector.extract_strided_slice %10 {offsets = [0, 0, 17], sizes = [4, 16, 1], strides = [1, 1, 1]} : vector<4x16x20xf32> to vector<4x16x1xf32>
    %47 = vector.extract_strided_slice %10 {offsets = [0, 0, 19], sizes = [4, 16, 1], strides = [1, 1, 1]} : vector<4x16x20xf32> to vector<4x16x1xf32>
    %48 = tpu.concatenate %46, %3 in 2 : vector<4x16x1xf32>, vector<4x16x1xf32> -> vector<4x16x2xf32>
    %49 = arith.truncf %48 : vector<4x16x2xf32> to vector<4x16x2xbf16>
    %50 = tpu.concatenate %3, %47 in 2 : vector<4x16x1xf32>, vector<4x16x1xf32> -> vector<4x16x2xf32>
    %51 = arith.truncf %50 : vector<4x16x2xf32> to vector<4x16x2xbf16>
    "tpu.trace_start"() <{level = 10 : i32, message = "bik,bjk->bij"}> : () -> ()
    %cst_18 = arith.constant dense<0.000000e+00> : vector<4x16x16xf32>
    %52 = tpu.matmul %49, %51, %cst_18 {dimension_numbers = #tpu.dot_dimension_numbers<[2], [2], [1], [1], [0, 0, 0, 1, 1, 1], [0], [0]>} : vector<4x16x2xbf16>, vector<4x16x2xbf16>, vector<4x16x16xf32> -> vector<4x16x16xf32>
    %cst_19 = arith.constant 0.000000e+00 : f32
    "tpu.trace_stop"() : () -> ()
    %53 = vector.broadcast %cst_19 : f32 to vector<4x16x16xf32>
    %54 = arith.cmpf ogt, %52, %53 : vector<4x16x16xf32>
    %cst_20 = arith.constant 2.000000e-01 : f32
    %55 = vector.broadcast %cst_20 : f32 to vector<4x16x16xf32>
    %56 = arith.mulf %55, %52 : vector<4x16x16xf32>
    %57 = arith.select %54, %52, %56 : vector<4x16x16xi1>, vector<4x16x16xf32>
    %cst_21 = arith.constant -9.000000e+15 : f32
    %58 = vector.broadcast %cst_21 : f32 to vector<4x16x16xf32>
    %59 = arith.select %2, %57, %58 : vector<4x16x16xi1>, vector<4x16x16xf32>
    %cst_22 = arith.constant dense<0xFF800000> : vector<4x16xf32>
    %60 = vector.multi_reduction <maximumf>, %59, %cst_22 [2] : vector<4x16x16xf32> to vector<4x16xf32>
    %61 = vector.shape_cast %60 : vector<4x16xf32> to vector<4x16x1xf32>
    %62 = vector.broadcast %61 : vector<4x16x1xf32> to vector<4x16x16xf32>
    %63 = arith.subf %59, %62 : vector<4x16x16xf32>
    %64 = math.exp %63 : vector<4x16x16xf32>
    %cst_23 = arith.constant dense<0.000000e+00> : vector<4x16xf32>
    %65 = vector.multi_reduction <add>, %64, %cst_23 [2] : vector<4x16x16xf32> to vector<4x16xf32>
    %66 = vector.shape_cast %65 : vector<4x16xf32> to vector<4x16x1xf32>
    %67 = tpu.reciprocal %66 {approx = true} : vector<4x16x1xf32> -> vector<4x16x1xf32>
    %68 = vector.broadcast %67 : vector<4x16x1xf32> to vector<4x16x16xf32>
    %69 = arith.mulf %64, %68 : vector<4x16x16xf32>
    %70 = arith.truncf %69 : vector<4x16x16xf32> to vector<4x16x16xbf16>
    %71 = arith.truncf %45 : vector<4x16x8xf32> to vector<4x16x8xbf16>
    "tpu.trace_start"() <{level = 10 : i32, message = "bij,bjk->bik"}> : () -> ()
    %cst_24 = arith.constant dense<0.000000e+00> : vector<4x16x8xf32>
    %72 = tpu.matmul %70, %71, %cst_24 {dimension_numbers = #tpu.dot_dimension_numbers<[2], [1], [1], [2], [0, 0, 0, 1, 1, 2], [0], [0]>} : vector<4x16x16xbf16>, vector<4x16x8xbf16>, vector<4x16x8xf32> -> vector<4x16x8xf32>
    %cst_25 = arith.constant 0.000000e+00 : f32
    "tpu.trace_stop"() : () -> ()
    %73 = vector.broadcast %cst_25 : f32 to vector<4x16x8xf32>
    %74 = arith.cmpf ogt, %72, %73 : vector<4x16x8xf32>
    %75 = math.exp %72 : vector<4x16x8xf32>
    %cst_26 = arith.constant 1.000000e+00 : f32
    %76 = vector.broadcast %cst_26 : f32 to vector<4x16x8xf32>
    %77 = arith.subf %75, %76 : vector<4x16x8xf32>
    %78 = arith.select %74, %72, %77 : vector<4x16x8xi1>, vector<4x16x8xf32>
    %79 = tpu.concatenate %44, %78 in 2 : vector<4x16x8xf32>, vector<4x16x8xf32> -> vector<4x16x16xf32>
    %80 = vector.shape_cast %79 : vector<4x16x16xf32> to vector<64x16xf32>
    %81 = arith.truncf %80 : vector<64x16xf32> to vector<64x16xbf16>
    %c0_27 = arith.constant 0 : index
    %c0_28 = arith.constant 0 : index
    %82 = vector.load %arg4[%c0_27, %c0_28] : memref<16x128xf32, #tpu.memory_space<vmem>>, vector<16x128xf32>
    %83 = arith.truncf %82 : vector<16x128xf32> to vector<16x128xbf16>
    %cst_29 = arith.constant dense<0.000000e+00> : vector<64x128xf32>
    %84 = tpu.matmul %81, %83, %cst_29 {dimension_numbers = #tpu.dot_dimension_numbers<[1], [0], [0], [1], [0, 0, 1, 1], [], []>} : vector<64x16xbf16>, vector<16x128xbf16>, vector<64x128xf32> -> vector<64x128xf32>
    %85 = vector.shape_cast %84 : vector<64x128xf32> to vector<4x16x128xf32>
    %86 = vector.extract_strided_slice %85 {offsets = [0, 0, 4], sizes = [4, 16, 1], strides = [1, 1, 1]} : vector<4x16x128xf32> to vector<4x16x1xf32>
    %87 = vector.extract_strided_slice %85 {offsets = [0, 0, 5], sizes = [4, 16, 1], strides = [1, 1, 1]} : vector<4x16x128xf32> to vector<4x16x1xf32>
    %88 = tpu.concatenate %86, %3 in 2 : vector<4x16x1xf32>, vector<4x16x1xf32> -> vector<4x16x2xf32>
    %89 = arith.truncf %88 : vector<4x16x2xf32> to vector<4x16x2xbf16>
    %90 = tpu.concatenate %3, %87 in 2 : vector<4x16x1xf32>, vector<4x16x1xf32> -> vector<4x16x2xf32>
    %91 = arith.truncf %90 : vector<4x16x2xf32> to vector<4x16x2xbf16>
    "tpu.trace_start"() <{level = 10 : i32, message = "bik,bjk->bij"}> : () -> ()
    %cst_30 = arith.constant dense<0.000000e+00> : vector<4x16x16xf32>
    %92 = tpu.matmul %89, %91, %cst_30 {dimension_numbers = #tpu.dot_dimension_numbers<[2], [2], [1], [1], [0, 0, 0, 1, 1, 1], [0], [0]>} : vector<4x16x2xbf16>, vector<4x16x2xbf16>, vector<4x16x16xf32> -> vector<4x16x16xf32>
    %cst_31 = arith.constant 0.000000e+00 : f32
    "tpu.trace_stop"() : () -> ()
    %93 = vector.broadcast %cst_31 : f32 to vector<4x16x16xf32>
    %94 = arith.cmpf ogt, %92, %93 : vector<4x16x16xf32>
    %cst_32 = arith.constant 2.000000e-01 : f32
    %95 = vector.broadcast %cst_32 : f32 to vector<4x16x16xf32>
    %96 = arith.mulf %95, %92 : vector<4x16x16xf32>
    %97 = arith.select %94, %92, %96 : vector<4x16x16xi1>, vector<4x16x16xf32>
    %cst_33 = arith.constant -9.000000e+15 : f32
    %98 = vector.broadcast %cst_33 : f32 to vector<4x16x16xf32>
    %99 = arith.select %2, %97, %98 : vector<4x16x16xi1>, vector<4x16x16xf32>
    %cst_34 = arith.constant dense<0xFF800000> : vector<4x16xf32>
    %100 = vector.multi_reduction <maximumf>, %99, %cst_34 [2] : vector<4x16x16xf32> to vector<4x16xf32>
    %101 = vector.shape_cast %100 : vector<4x16xf32> to vector<4x16x1xf32>
    %102 = vector.broadcast %101 : vector<4x16x1xf32> to vector<4x16x16xf32>
    %103 = arith.subf %99, %102 : vector<4x16x16xf32>
    %104 = math.exp %103 : vector<4x16x16xf32>
    %cst_35 = arith.constant dense<0.000000e+00> : vector<4x16xf32>
    %105 = vector.multi_reduction <add>, %104, %cst_35 [2] : vector<4x16x16xf32> to vector<4x16xf32>
    %106 = vector.shape_cast %105 : vector<4x16xf32> to vector<4x16x1xf32>
    %107 = tpu.reciprocal %106 {approx = true} : vector<4x16x1xf32> -> vector<4x16x1xf32>
    %108 = vector.broadcast %107 : vector<4x16x1xf32> to vector<4x16x16xf32>
    %109 = arith.mulf %104, %108 : vector<4x16x16xf32>
    %110 = arith.truncf %109 : vector<4x16x16xf32> to vector<4x16x16xbf16>
    %111 = arith.truncf %85 : vector<4x16x128xf32> to vector<4x16x128xbf16>
    "tpu.trace_start"() <{level = 10 : i32, message = "bij,bjk->bik"}> : () -> ()
    %cst_36 = arith.constant dense<0.000000e+00> : vector<4x16x128xf32>
    %112 = tpu.matmul %110, %111, %cst_36 {dimension_numbers = #tpu.dot_dimension_numbers<[2], [1], [1], [2], [0, 0, 0, 1, 1, 2], [0], [0]>} : vector<4x16x16xbf16>, vector<4x16x128xbf16>, vector<4x16x128xf32> -> vector<4x16x128xf32>
    %cst_37 = arith.constant 0.000000e+00 : f32
    "tpu.trace_stop"() : () -> ()
    %113 = vector.broadcast %cst_37 : f32 to vector<4x16x128xf32>
    %114 = arith.cmpf ogt, %112, %113 : vector<4x16x128xf32>
    %115 = math.exp %112 : vector<4x16x128xf32>
    %cst_38 = arith.constant 1.000000e+00 : f32
    %116 = vector.broadcast %cst_38 : f32 to vector<4x16x128xf32>
    %117 = arith.subf %115, %116 : vector<4x16x128xf32>
    %118 = arith.select %114, %112, %117 : vector<4x16x128xi1>, vector<4x16x128xf32>
    %cst_39 = arith.constant dense<0xFF800000> : vector<4x128xf32>
    %119 = vector.multi_reduction <maximumf>, %118, %cst_39 [1] : vector<4x16x128xf32> to vector<4x128xf32>
    %120 = vector.shape_cast %119 : vector<4x128xf32> to vector<4x1x128xf32>
    %121 = vector.broadcast %120 : vector<4x1x128xf32> to vector<4x16x128xf32>
    %122 = arith.subf %118, %121 : vector<4x16x128xf32>
    %123 = math.exp %122 : vector<4x16x128xf32>
    %cst_40 = arith.constant dense<0.000000e+00> : vector<4x128xf32>
    %124 = vector.multi_reduction <add>, %123, %cst_40 [1] : vector<4x16x128xf32> to vector<4x128xf32>
    %125 = vector.shape_cast %124 : vector<4x128xf32> to vector<4x1x128xf32>
    %126 = tpu.reciprocal %125 {approx = true} : vector<4x1x128xf32> -> vector<4x1x128xf32>
    %127 = vector.broadcast %126 : vector<4x1x128xf32> to vector<4x16x128xf32>
    %128 = arith.mulf %123, %127 : vector<4x16x128xf32>
    %c0_41 = arith.constant 0 : index
    %c0_42 = arith.constant 0 : index
    %c0_43 = arith.constant 0 : index
    %129 = vector.load %arg5[%c0_41, %c0_42, %c0_43] : memref<4x16x128xf32, #tpu.memory_space<vmem>>, vector<4x16x128xf32>
    tpu.vector_store %arg5[%c0_41, %c0_42, %c0_43], %128 {strides = array<i32>} : memref<4x16x128xf32, #tpu.memory_space<vmem>>, vector<4x16x128xf32>,
    return
  }
  func.func @transform_0(%arg0: i32) -> (i32, i32, i32) {
    %c0_i32 = arith.constant 0 : i32
    %c0_i32_0 = arith.constant 0 : i32
    %c0_i32_1 = arith.constant 0 : i32
    return %arg0, %c0_i32, %c0_i32_0 : i32, i32, i32
  }
  func.func @transform_1(%arg0: i32) -> (i32, i32, i32) {
    %c0_i32 = arith.constant 0 : i32
    %c0_i32_0 = arith.constant 0 : i32
    %c0_i32_1 = arith.constant 0 : i32
    return %arg0, %c0_i32, %c0_i32_0 : i32, i32, i32
  }
  func.func @transform_2(%arg0: i32) -> (i32, i32) {
    %c0_i32 = arith.constant 0 : i32
    %c0_i32_0 = arith.constant 0 : i32
    %c0_i32_1 = arith.constant 0 : i32
    return %c0_i32, %c0_i32_0 : i32, i32
  }
  func.func @transform_3(%arg0: i32) -> (i32, i32) {
    %c0_i32 = arith.constant 0 : i32
    %c0_i32_0 = arith.constant 0 : i32
    %c0_i32_1 = arith.constant 0 : i32
    return %c0_i32, %c0_i32_0 : i32, i32
  }
  func.func @transform_4(%arg0: i32) -> (i32, i32, i32) {
    %c0_i32 = arith.constant 0 : i32
    %c0_i32_0 = arith.constant 0 : i32
    %c0_i32_1 = arith.constant 0 : i32
    return %arg0, %c0_i32, %c0_i32_0 : i32, i32, i32
  }
}

</mosaic_0001>

<bundles_post_ra>
// kernel: tpu_custom_call.1
= control target key start
LH: loop header
LB: loop body
LE: loop exit
PB: predicated region body
PF: predicated region fallthrough
CT: control target
= control target key end

     0   :  { %9 = vsyncpa [#allocation3], 0  ;;  %s3772_s0 = inlined_call_operand.vmem [shape: f32[8,16,8], index: 0, kind: input, shape index: {}]   ;;  %s3773_s1 = inlined_call_operand.vmem [shape: f32[8,16,16], index: 1, kind: input, shape index: {}]   ;;  %s3774_s2 = inlined_call_operand.vmem [shape: f32[8,20], index: 2, kind: input, shape index: {}]   ;;  %s3775_s3 = inlined_call_operand.vmem [shape: f32[16,128], index: 3, kind: input, shape index: {}]   ;;  %s3776_s4 = inlined_call_operand.hbm [shape: f32[8,16,128], index: 4, kind: output, shape index: {}]  }
   0x1   :  { %11 = vsyncpa [#allocation3 + $0x1], 0  ;;  %s3163_s15 = smov 0   ;;  %s3165_s16 = smov 0  }
   0x2   :  { %s3167_s17 = smov 0   ;;  %s3169_s18 = smov 0  }
   0x3 LB: > { %s3184_s19 = sadd.s32 4294967295, %s3126_s18   ;;  %s2448_s20 = sadd.s32 4294967294, %s3126_s18   ;;  %s3126_s18 = sphi %s3169_s18, %s3795_s18   ;;  %s3122_s17 = sphi %s3167_s17, %s3794_s17   ;;  %s3118_s16 = sphi %s3165_s16, %s3793_s16   ;;  %s3114_s15 = sphi %s3163_s15, %s3792_s15  }
   0x4   : > { %s3188_s21 = sadd.s32 1, %s3126_s18   ;;  %s118_s22 = sadd.s32 1, %s3122_s17 }
   0x5   : > { %s115_s23 = ssub.s32 %s3126_s18, %s3188_s21  ;;  %p128_p0 = scmp.ne.s32.totalorder %s3122_s17, %s3118_s16 }
   0x6   : > { %p116_p1 = scmp.eq.s32.totalorder %s115_s23, 0  ;;  %p129_p2 = scmp.eq.s32.totalorder %s3184_s19, 1 }
   0x7   : > { %p134_p3 = scmp.ne.s32.totalorder %s3118_s16, %s3114_s15  ;;  %p135_p4 = scmp.eq.s32.totalorder %s2448_s20, 1 }
   0x8   : > { %s3199_s24 = scalar_select %p116_p1, %s3122_s17, %s118_s22  }
   0x9   : > { %p3201_p5 = por %p129_p2, %p128_p0  ;;  %p3205_p6 = por %p135_p4, %p134_p3 }
   0xa   : > { %p2451_p7 = scmp.ge.s32.totalorder %s3126_s18, 1  ;;  %p179_p8 = scmp.lt.s32.totalorder %s3126_s18, 3 }
   0xc   : > { %p180_p9 = pnand %p2451_p7, %p179_p8 }
   0xd   : > { %v256_v0 = vld [vmem:[%s3774_s2] sm:$0xff] (!%p180_p9)  ;;  %vm271_vm0 = vcmask (!%p180_p9), 1043456   ;;  %s2453_s29 = sshll.u32 (!%p180_p9), %s3184_s19, 2  ;;  %vm258_vm1 = vcmask (!%p180_p9), 64512   ;;  %v3128_v15 = vmov (!%p180_p9), 0.0   ;;  %s3129_s8 = smov (!%p180_p9), 111  }
   0xe   : > { %183 = sbr.rel (%p180_p9) target bundleno = 3026 (0xbd2), region = 36  ;;  %v257_v1 = vpack.c.bf16 (!%p180_p9), %v256_v0, %v256_v0  ;;  %p213_p10 = scmp.lt.s32.totalorder (!%p180_p9), %s2453_s29, 7  ;;  %2593 = vmatprep.subr.bf16.mxu1 (!%p180_p9), %v3128_v15  ;;  %vm3130_vm2 = vmmov (!%p180_p9), 0   ;;  %vm372_vm3 = vcmask (!%p180_p9), 7168   ;;  %vm3777_vm4 = vcmask (!%p180_p9), 15360  }
   0xf   : > { %2595 = vmatprep.mubr.msk.bf16.mxu1 (!%p180_p9), %vm3130_vm2, %v3128_v15  ;;  %s3131_s9 = smov (!%p180_p9), 112   ;;  %vm642_vm7 = vcmask (!%p180_p9), 130048   ;;  %s3132_s13 = smov (!%p180_p9), 110  }
  0x10   : > { %2747 = vmatprep.subr.msk.bf16.mxu0 (!%p180_p9), %vm271_vm0, %v257_v1  ;;  %v273_v2 = vsel (!%p180_p9), %vm271_vm0, %v257_v1, 0  ;;  %s3133_s14 = smov (!%p180_p9), 120   ;;  %s3134_s28 = smov (!%p180_p9), 8  }
  0x11   : > { %2584 = vmatpush3.bf16.msra.mxu0 (!%p180_p9), %v273_v2 }
  0x12   : > { %2605 = vmatprep.subr.bf16.mxu0 (!%p180_p9), %v3128_v15 }
  0x15   : > { %s3797_s29 = smov (!%p213_p10, %s2453_s29), 7 }
  0x16   : > { %s2521_s30 = sshll.u32 %s3797_s29, 4  ;;  %s3135_s29 = smov 124  }
  0x17   : > { %s217_s7 = scalar_lea.vmem %s3772_s0, %s2521_s30  ;;  %s3334_s12 = scalar_lea.vmem %s3773_s1, %s2521_s30 }
  0x18   : > { %v244_v3 = vld [vmem:[%s217_s7] sm:$0xff]  ;;  %v245_v4 = vld [vmem:[%s217_s7 + $0x8] sm:$0xff]  ;;  %v246_v5 = vld [vmem:[%s217_s7 + $0x10] sm:$0xff]  ;;  %s209_s30 = sand.u32 1, %s3118_s16  }
  0x19   : > { %v252_v6 = vpack.c.bf16 %v245_v4, %v244_v3  ;;  %v247_v7 = vld [vmem:[%s217_s7 + $0x18] sm:$0xff]  ;;  %v248_v8 = vld [vmem:[%s217_s7 + $0x20] sm:$0xff]  ;;  %v249_v9 = vld [vmem:[%s217_s7 + $0x28] sm:$0xff]  ;;  %s2452_s5 = sshll.u32 %s209_s30, 6 }
  0x1a   : > { %v253_v10 = vpack.c.bf16 %v247_v7, %v246_v5  ;;  %v254_v11 = vpack.c.bf16 %v249_v9, %v248_v8  ;;  %v250_v12 = vld [vmem:[%s217_s7 + $0x30] sm:$0xff]  ;;  %v251_v13 = vld [vmem:[%s217_s7 + $0x38] sm:$0xff]  ;;  %s211_s6 = scalar_lea.vmem [#allocation2], %s2452_s5  ;;  %s2524_s7 = sshll.u32 %s3184_s19, 10 }
  0x1b   : > { %2585 = vmatprep.mubr.msk.bf16.mxu0 %vm258_vm1, %v252_v6  ;;  %v255_v14 = vpack.c.bf16 %v251_v13, %v250_v12  ;;  %s3724_s11 = scalar_lea.hbm %s3776_s4, %s2524_s7  ;;  %s3730_s19 = scalar_lea.sflag [#allocation3], %s209_s30 }
  0x1c   : > { %2586 = vmatmul.mubr.msk.bf16.vlgmr.msra.gmra.mrb[0].mxu0 %vm258_vm1, %v253_v10 }
  0x1d   : > { %2589 = vmatprep.mubr.msk.bf16.mxu0 %vm258_vm1, %v254_v11 }
  0x24   : > { %2590 = vmatmul.mubr.msk.bf16.gmra.mrb[4].mxu0 %vm258_vm1, %v255_v14 }
  0x25   : > { %2607 = vmatprep.mubr.msk.bf16.mxu0 %vm3130_vm2, %v3128_v15 }
  0xef   : > { %v2587_v16 = vpop.f32.mrb[0].mxu0 }
  0xf0   : > { %v309_v17 = vpop.f32.mrb[1].mxu0 }
  0xf1   : > { %v2588_v18 = vpop.f32.mrb[2].mxu0 }
  0xf2   : > { %v3229_v19 = vpack.c.bf16 %v2588_v18, %v2587_v16  ;;  %v312_v20 = vpop.f32.mrb[3].mxu0  ;;  %v3231_v21 = vpack.i.bf16 %v2588_v18, %v2587_v16 }
  0xf3   : > { %v3233_v22 = vpack.c.bf16 %v312_v20, %v309_v17  ;;  %v3235_v23 = vpack.i.bf16 %v312_v20, %v309_v17 }
  0xf4   : > { %2807 = vrot.lane.b32.xlu1 %v3231_v21, %s3129_s8 }
  0xf5   : > { %2797 = vrot.lane.b32.xlu0 %v3235_v23, %s3129_s8 }
  0xf7   : > { %v2591_v24 = vpop.f32.mrb[4].mxu0 }
  0xf8   : > { %v325_v25 = vpop.f32.mrb[5].mxu0 }
  0xf9   : > { %2802 = vrot.lane.b32.xlu0 %v3235_v23, %s3131_s9  ;;  %v2592_v26 = vpop.f32.mrb[6].mxu0 }
  0xfa   : > { %v3244_v27 = vpack.c.bf16 %v2592_v26, %v2591_v24  ;;  %v328_v28 = vpop.f32.mrb[7].mxu0  ;;  %v3246_v29 = vpack.i.bf16 %v2592_v26, %v2591_v24 }
  0xfb   : > { %v3248_v30 = vpack.c.bf16 %v328_v28, %v325_v25  ;;  %v3250_v31 = vpack.i.bf16 %v328_v28, %v325_v25 }
  0xfd   : > { %2812 = vrot.lane.b32.xlu0 %v3231_v21, %s3131_s9  ;;  %2817 = vrot.lane.b32.xlu1 %v3250_v31, %s3129_s8 }
 0x101   : > { %2827 = vrot.lane.b32.xlu0 %v3250_v31, %s3131_s9  ;;  %2822 = vrot.lane.b32.xlu1 %v3246_v29, %s3129_s8  ;;  %s2374_s8 = sshll.u32 %s211_s6, 4  ;;  %s3726_s8 = int_to_ptr.vmem [resolvable:$true] %s2374_s8 }
 0x105   : > { %2832 = vrot.lane.b32.xlu1 %v3246_v29, %s3131_s9 }
 0x166   : > { %v2808_v32 = vpop.permute.xlu1 %2807 }
 0x167   : > { %v2810_v33 = vunpack.i.h.bf16 %v2808_v32  ;;  %v2809_v34 = vunpack.i.l.bf16 %v2808_v32  ;;  %v2798_v35 = vpop.permute.xlu0 %2797 }
 0x168   : > { %v2800_v36 = vunpack.i.h.bf16 %v2798_v35  ;;  %v2799_v37 = vunpack.i.l.bf16 %v2798_v35 }
 0x169   : > { %v3258_v38 = vsel %vm372_vm3, %v2810_v33, 1.0  ;;  %v3261_v39 = vsel %vm372_vm3, %v2809_v34, 1.0  ;;  %v412_v51 = vsel %vm372_vm3, 1.0, %v2810_v33  ;;  %v411_v52 = vsel %vm372_vm3, 1.0, %v2809_v34 }
 0x16a   : > { %v964_v40 = vpack.c.bf16 %v3258_v38, %v3261_v39  ;;  %v3266_v41 = vsel %vm372_vm3, %v2800_v36, 1.0  ;;  %v3269_v42 = vsel %vm372_vm3, %v2799_v37, 1.0  ;;  %v409_v45 = vsel %vm372_vm3, 1.0, %v2799_v37 }
 0x16b   : > { %v963_v43 = vpack.c.bf16 %v3266_v41, %v3269_v42  ;;  %v2803_v44 = vpop.permute.xlu0 %2802  ;;  %v410_v46 = vsel %vm372_vm3, 1.0, %v2800_v36  ;;  %v418_v59 = vpack.c.bf16 %v412_v51, %v411_v52 }
 0x16c   : > { %v2805_v47 = vunpack.i.h.bf16 %v2803_v44  ;;  %v2804_v48 = vunpack.i.l.bf16 %v2803_v44  ;;  %v417_v49 = vpack.c.bf16 %v410_v46, %v409_v45 }
 0x16d   : > { %v473_v11 = vsel %vm3777_vm4, %v418_v59, 0 }
 0x16e   : > { %v426_v50 = vsel %vm3777_vm4, %v417_v49, 0  ;;  %v374_v55 = vsel %vm372_vm3, %v2805_v47, 1.0  ;;  %v373_v56 = vsel %vm372_vm3, %v2804_v48, 1.0  ;;  %v3337_v47 = vld [vmem:[%s3334_s12] sm:$0xff]  ;;  %v3340_v49 = vld [vmem:[%s3334_s12 + $0x8] sm:$0xff] }
 0x16f   : > { %2594 = vmatpush3.bf16.xpose.msra.mxu1 %v426_v50  ;;  %v2813_v53 = vpop.permute.xlu0 %2812  ;;  %v2818_v54 = vpop.permute.xlu1 %2817  ;;  %v381_v62 = vpack.c.bf16 %v374_v55, %v373_v56  ;;  %vm236_vm6 = vcmp.gt.f32.partialorder %v3337_v47, 0.0  ;;  %vm237_vm9 = vcmp.gt.f32.partialorder %v3340_v49, 0.0 }
 0x170   : > { %v2820_v57 = vunpack.i.h.bf16 %v2818_v54  ;;  %v2819_v58 = vunpack.i.l.bf16 %v2818_v54  ;;  %2599 = vmatprep.subr.bf16.mxu1 %v3128_v15  ;;  %v2815_v3 = vunpack.i.h.bf16 %v2813_v53  ;;  %v2814_v4 = vunpack.i.l.bf16 %v2813_v53 }
 0x172   : > { %v414_v60 = vsel %vm372_vm3, 1.0, %v2820_v57  ;;  %v3283_v61 = vsel %vm372_vm3, %v2820_v57, 1.0  ;;  %v413_v63 = vsel %vm372_vm3, 1.0, %v2819_v58  ;;  %v3287_v0 = vsel %vm372_vm3, %v2819_v58, 1.0 }
 0x173   : > { %v2828_v1 = vpop.permute.xlu0 %2827  ;;  %v2823_v2 = vpop.permute.xlu1 %2822  ;;  %v419_v5 = vpack.c.bf16 %v414_v60, %v413_v63  ;;  %v965_v6 = vpack.c.bf16 %v3283_v61, %v3287_v0  ;;  %v376_v17 = vsel %vm372_vm3, %v2815_v3, 1.0  ;;  %v375_v20 = vsel %vm372_vm3, %v2814_v4, 1.0  ;;  %v3360_v63 = vld [vmem:[%s3334_s12 + $0x20] sm:$0xff]  ;;  %v3363_v3 = vld [vmem:[%s3334_s12 + $0x18] sm:$0xff] }
 0x174   : > { %v2830_v7 = vunpack.i.h.bf16 %v2828_v1  ;;  %v2829_v8 = vunpack.i.l.bf16 %v2828_v1  ;;  %v2825_v9 = vunpack.i.h.bf16 %v2823_v2  ;;  %v2824_v10 = vunpack.i.l.bf16 %v2823_v2 }
 0x175   : > { %v520_v12 = vsel %vm3777_vm4, %v419_v5, 0  ;;  %v382_v33 = vpack.c.bf16 %v376_v17, %v375_v20  ;;  %vm240_vm13 = vcmp.gt.f32.partialorder %v3360_v63, 0.0  ;;  %vm239_vm14 = vcmp.gt.f32.partialorder %v3363_v3, 0.0 }
 0x176   : > { %2596 = vmatmul.mubr.msk.bf16.vlgmr.msra.gmra.mrb[0].mxu1 %vm3777_vm4, %v381_v62  ;;  %v416_v13 = vsel %vm372_vm3, 1.0, %v2825_v9  ;;  %v3296_v14 = vsel %vm372_vm3, %v2825_v9, 1.0  ;;  %v415_v16 = vsel %vm372_vm3, 1.0, %v2824_v10  ;;  %2606 = vmatpush3.bf16.xpose.msra.mxu0 %v520_v12  ;;  %v3301_v18 = vsel %vm372_vm3, %v2824_v10, 1.0  ;;  %v3357_v62 = vld [vmem:[%s3334_s12 + $0x10] sm:$0xff] }
 0x177   : > { %2600 = vmatpush3.bf16.xpose.msra.mxu1 %v473_v11  ;;  %2601 = vmatprep.mubr.msk.bf16.mxu1 %vm3130_vm2, %v3128_v15  ;;  %v378_v24 = vsel %vm372_vm3, %v2830_v7, 1.0  ;;  %v377_v25 = vsel %vm372_vm3, %v2829_v8, 1.0  ;;  %v966_v26 = vpack.c.bf16 %v3296_v14, %v3301_v18  ;;  %v420_v28 = vpack.c.bf16 %v416_v13, %v415_v16  ;;  %v2833_v32 = vpop.permute.xlu1 %2832  ;;  %v3369_v13 = vld [vmem:[%s3334_s12 + $0x28] sm:$0xff] }
 0x178   : > { %2611 = vmatprep.subr.bf16.mxu1 %v3128_v15  ;;  %2617 = vmatprep.subr.bf16.mxu0 %v3128_v15  ;;  %v383_v34 = vpack.c.bf16 %v378_v24, %v377_v25  ;;  %v2835_v35 = vunpack.i.h.bf16 %v2833_v32  ;;  %v2834_v36 = vunpack.i.l.bf16 %v2833_v32  ;;  %vm238_vm12 = vcmp.gt.f32.partialorder %v3357_v62, 0.0 }
 0x179   : > { %v567_v37 = vsel %vm3777_vm4, %v420_v28, 0 }
 0x17a   : > { %v380_v44 = vsel %vm372_vm3, %v2835_v35, 1.0  ;;  %v379_v45 = vsel %vm372_vm3, %v2834_v36, 1.0  ;;  %v3378_v35 = vld [vmem:[%s3334_s12 + $0x30] sm:$0xff] }
 0x17b   : > { %v384_v46 = vpack.c.bf16 %v380_v44, %v379_v45 }
 0x17d   : > { %2608 = vmatmul.mubr.msk.bf16.vlgmr.msra.gmra.mrb[8].mxu0 %vm3777_vm4, %v383_v34 }
 0x17e   : > { %2602 = vmatmul.mubr.msk.bf16.vlgmr.msra.gmra.mrb[4].mxu1 %vm3777_vm4, %v382_v33  ;;  %2618 = vmatpush3.bf16.msra.mxu0 %v3233_v22 }
 0x17f   : > { %2612 = vmatpush3.bf16.xpose.msra.mxu1 %v567_v37  ;;  %2613 = vmatprep.mubr.msk.bf16.mxu1 %vm3130_vm2, %v3128_v15 }
 0x180   : > { %2623 = vmatprep.subr.bf16.mxu1 %v3128_v15  ;;  %2619 = vmatprep.mubr.msk.bf16.mxu0 %vm3130_vm2, %v3128_v15 }
 0x181   : > { %2629 = vmatprep.subr.bf16.mxu0 %v3128_v15 }
 0x186   : > { %2614 = vmatmul.mubr.msk.bf16.vlgmr.msra.gmra.mrb[8].mxu1 %vm3777_vm4, %v384_v46 }
 0x187   : > { %2624 = vmatpush3.bf16.msra.mxu1 %v3229_v19  ;;  %2625 = vmatprep.mubr.msk.bf16.mxu1 %vm3130_vm2, %v3128_v15 }
 0x188   : > { %2635 = vmatprep.subr.bf16.mxu1 %v3128_v15 }
 0x249   : > { %v462_v48 = vpop.f32.mrb[0].mxu1 }
 0x24a   : > { %vm610_vm5 = vcmp.gt.f32.partialorder %v462_v48, 0.0  ;;  %v618_v50 = vmul.f32 0.2, %v462_v48  ;;  %v2597_v51 = vpop.f32.mrb[1].mxu1 }
 0x24b   : > { %v465_v52 = vpop.f32.mrb[2].mxu1 }
 0x24c   : > { %vm611_vm8 = vcmp.gt.f32.partialorder %v465_v52, 0.0  ;;  %v619_v53 = vmul.f32 0.2, %v465_v52  ;;  %v2598_v54 = vpop.f32.mrb[3].mxu1  ;;  %v626_v55 = vsel %vm610_vm5, %v462_v48, %v618_v50  ;;  %vm241_vm5 = vcmp.gt.f32.partialorder %v3369_v13, 0.0  ;;  %v3385_v48 = vld [vmem:[%s3334_s12 + $0x38] sm:$0xff] }
 0x24d   : > { %v3346_v56 = vsel %vm236_vm6, %v626_v55, -9e+15  ;;  %s3064_s12 = scalar_lea.vmem %s3726_s8, 1024 }
 0x24e   : > { %v643_v57 = vsel %vm642_vm7, %v3346_v56, -inf  ;;  %v627_v58 = vsel %vm611_vm8, %v465_v52, %v619_v53  ;;  %p3065_p11 = scmp.ne.s32.totalorder %s3726_s8, %s3064_s12 }
 0x24f   : > { %644 = vmax.xlane.f32.xlu0 %v643_v57  ;;  %v3352_v59 = vsel %vm237_vm9, %v627_v58, -9e+15 }
 0x250   : > { %v646_v60 = vsel %vm642_vm7, %v3352_v59, -inf  ;;  %v556_v2 = vpop.f32.mrb[8].mxu0  ;;  %p3066_p12 = pnand %p3065_p11, %p3201_p5 }
 0x251   : > { %v509_v1 = vpop.f32.mrb[4].mxu1  ;;  %647 = vmax.xlane.f32.xlu1 %v646_v60  ;;  %vm614_vm11 = vcmp.gt.f32.partialorder %v556_v2, 0.0  ;;  %v622_v5 = vmul.f32 0.2, %v556_v2  ;;  %v2609_v8 = vpop.f32.mrb[9].mxu0 }
 0x252   : > { %vm612_vm10 = vcmp.gt.f32.partialorder %v509_v1, 0.0  ;;  %v620_v4 = vmul.f32 0.2, %v509_v1  ;;  %v2603_v7 = vpop.f32.mrb[5].mxu1  ;;  %v559_v10 = vpop.f32.mrb[10].mxu0  ;;  %p3067_p13 = pneg %p3066_p12 }
 0x253   : > { %v512_v9 = vpop.f32.mrb[6].mxu1  ;;  %v630_v12 = vsel %vm614_vm11, %v556_v2, %v622_v5  ;;  %vm615_vm0 = vcmp.gt.f32.partialorder %v559_v10, 0.0  ;;  %v623_v17 = vmul.f32 0.2, %v559_v10  ;;  %v2610_v24 = vpop.f32.mrb[11].mxu0 }
 0x254   : > { %v628_v11 = vsel %vm612_vm10, %v509_v1, %v620_v4  ;;  %vm613_vm15 = vcmp.gt.f32.partialorder %v512_v9, 0.0  ;;  %v621_v16 = vmul.f32 0.2, %v512_v9  ;;  %v2604_v20 = vpop.f32.mrb[7].mxu1  ;;  %v638_v28 = vsel %vm240_vm13, %v630_v12, -9e+15 }
 0x255   : > { %v636_v25 = vsel %vm238_vm12, %v628_v11, -9e+15  ;;  %v655_v33 = vsel %vm642_vm7, %v638_v28, -inf  ;;  %v631_v44 = vsel %vm615_vm0, %v559_v10, %v623_v17  ;;  %vm3779_vm10 = vcmp.gt.f32.partialorder %v3378_v35, 0.0 }
 0x256   : > { %v649_v32 = vsel %vm642_vm7, %v636_v25, -inf  ;;  %v629_v34 = vsel %vm613_vm15, %v512_v9, %v621_v16  ;;  %656 = vmax.xlane.f32.xlu1 %v655_v33  ;;  %v639_v55 = vsel %vm241_vm5, %v631_v44, -9e+15  ;;  %vm3778_vm15 = vcmp.gt.f32.partialorder %v3385_v48, 0.0 }
 0x257   : > { %650 = vmax.xlane.f32.xlu0 %v649_v32  ;;  %v637_v36 = vsel %vm239_vm14, %v629_v34, -9e+15  ;;  %v658_v1 = vsel %vm642_vm7, %v639_v55, -inf }
 0x258   : > { %v652_v50 = vsel %vm642_vm7, %v637_v36, -inf }
 0x259   : > { %v603_v37 = vpop.f32.mrb[8].mxu1 }
 0x25a   : > { %vm616_vm8 = vcmp.gt.f32.partialorder %v603_v37, 0.0  ;;  %v624_v45 = vmul.f32 0.2, %v603_v37  ;;  %v2615_v46 = vpop.f32.mrb[9].mxu1 }
 0x25b   : > { %v606_v51 = vpop.f32.mrb[10].mxu1  ;;  %653 = vmax.xlane.f32.xlu0 %v652_v50 }
 0x25c   : > { %vm617_vm11 = vcmp.gt.f32.partialorder %v606_v51, 0.0  ;;  %v625_v52 = vmul.f32 0.2, %v606_v51  ;;  %v2616_v53 = vpop.f32.mrb[11].mxu1  ;;  %v632_v54 = vsel %vm616_vm8, %v603_v37, %v624_v45 }
 0x25d   : > { %v640_v57 = vsel %vm3779_vm10, %v632_v54, -9e+15 }
 0x25e   : > { %v661_v58 = vsel %vm642_vm7, %v640_v57, -inf  ;;  %v633_v60 = vsel %vm617_vm11, %v606_v51, %v625_v52 }
 0x25f   : > { %662 = vmax.xlane.f32.xlu1 %v661_v58  ;;  %659 = vmax.xlane.f32.xlu0 %v658_v1  ;;  %v641_v2 = vsel %vm3778_vm15, %v633_v60, -9e+15 }
 0x260   : > { %v664_v4 = vsel %vm642_vm7, %v641_v2, -inf }
 0x263   : > { %665 = vmax.xlane.f32.xlu0 %v664_v4 }
 0x2dc   : > { %v645_v5 = vpop.xlane.xlu0 %644 }
 0x2dd   : > { %v667_v7 = vsub.f32 %v3346_v56, %v645_v5 }
 0x2de   : > { %v648_v8 = vpop.xlane.xlu1 %647 }
 0x2df   : > { %v675_v9 = vmul.f32 1.442695, %v667_v7  ;;  %v668_v10 = vsub.f32 %v3352_v59, %v648_v8 }
 0x2e1   : > { %2896 = vpow2.f32 %v675_v9  ;;  %v677_v11 = vmul.f32 1.442695, %v668_v10 }
 0x2e3   : > { %2898 = vpow2.f32 %v677_v11  ;;  %v657_v16 = vpop.xlane.xlu1 %656 }
 0x2e4   : > { %v651_v12 = vpop.xlane.xlu0 %650  ;;  %v671_v20 = vsub.f32 %v638_v28, %v657_v16 }
 0x2e5   : > { %v669_v17 = vsub.f32 %v636_v25, %v651_v12 }
 0x2e6   : > { %v683_v32 = vmul.f32 1.442695, %v671_v20 }
 0x2e7   : > { %v679_v24 = vmul.f32 1.442695, %v669_v17 }
 0x2e8   : > { %v654_v33 = vpop.xlane.xlu0 %653 }
 0x2e9   : > { %2900 = vpow2.f32 %v679_v24  ;;  %v670_v34 = vsub.f32 %v637_v36, %v654_v33 }
 0x2ea   : > { %2902 = vpow2.f32 %v683_v32 }
 0x2eb   : > { %v2897_v37 = vpop.eup %2896  ;;  %v681_v44 = vmul.f32 1.442695, %v670_v34 }
 0x2ec   : > { %v663_v56 = vpop.xlane.xlu1 %662  ;;  %v691_v45 = vsel %vm642_vm7, %v2897_v37, 0.0  ;;  %v660_v50 = vpop.xlane.xlu0 %659 }
 0x2ed   : > { %v2899_v46 = vpop.eup %2898  ;;  %v673_v59 = vsub.f32 %v640_v57, %v663_v56  ;;  %692 = vadd.xlane.f32.xlu1 %v691_v45  ;;  %2904 = vpow2.f32 %v681_v44  ;;  %v672_v51 = vsub.f32 %v639_v55, %v660_v50 }
 0x2ee   : > { %v694_v25 = vsel %vm642_vm7, %v2899_v46, 0.0 }
 0x2ef   : > { %v687_v28 = vmul.f32 1.442695, %v673_v59  ;;  %695 = vadd.xlane.f32.xlu0 %v694_v25  ;;  %v685_v52 = vmul.f32 1.442695, %v672_v51 }
 0x2f0   : > { %v666_v53 = vpop.xlane.xlu0 %665 }
 0x2f1   : > { %2906 = vpow2.f32 %v687_v28  ;;  %v674_v36 = vsub.f32 %v641_v2, %v666_v53 }
 0x2f2   : > { %2908 = vpow2.f32 %v685_v52 }
 0x2f3   : > { %v2901_v54 = vpop.eup %2900  ;;  %v689_v58 = vmul.f32 1.442695, %v674_v36 }
 0x2f4   : > { %v697_v60 = vsel %vm642_vm7, %v2901_v54, 0.0  ;;  %v3403_v1 = vpop.eup %2902 }
 0x2f5   : > { %2910 = vpow2.f32 %v689_v58  ;;  %698 = vadd.xlane.f32.xlu1 %v697_v60  ;;  %v703_v55 = vsel %vm642_vm7, %v3403_v1, 0.0 }
 0x2f7   : > { %v2905_v57 = vpop.eup %2904 }
 0x2f8   : > { %v700_v4 = vsel %vm642_vm7, %v2905_v57, 0.0 }
 0x2f9   : > { %704 = vadd.xlane.f32.xlu1 %v703_v55  ;;  %701 = vadd.xlane.f32.xlu0 %v700_v4 }
 0x2fb   : > { %v3408_v5 = vpop.eup %2906 }
 0x2fc   : > { %v2909_v7 = vpop.eup %2908  ;;  %v709_v2 = vsel %vm642_vm7, %v3408_v5, 0.0 }
 0x2fd   : > { %v706_v8 = vsel %vm642_vm7, %v2909_v7, 0.0  ;;  %710 = vadd.xlane.f32.xlu1 %v709_v2 }
 0x2fe   : > { %707 = vadd.xlane.f32.xlu0 %v706_v8 }
 0x2ff   : > { %v3413_v9 = vpop.eup %2910 }
 0x300   : > { %v712_v10 = vsel %vm642_vm7, %v3413_v9, 0.0 }
 0x302   : > { %713 = vadd.xlane.f32.xlu0 %v712_v10 }
 0x30e   : > { %2837 = vrot.lane.b32.xlu1 %v3235_v23, %s3132_s13 }
 0x312   : > { %2847 = vrot.lane.b32.xlu1 %v3250_v31, %s3132_s13 }
 0x316   : > { %2852 = vrot.lane.b32.xlu1 %v3246_v29, %s3132_s13 }
 0x318   : > { %2842 = vrot.lane.b32.xlu0 %v3231_v21, %s3132_s13  ;;  %s3136_s13 = smov [#allocation2]  }
 0x37a   : > { %v693_v11 = vpop.xlane.xlu1 %692 }
 0x37b   : > { %2912 = vrcp.f32 %v693_v11 }
 0x37c   : > { %v696_v12 = vpop.xlane.xlu0 %695 }
 0x37d   : > { %2914 = vrcp.f32 %v696_v12 }
 0x382   : > { %v699_v16 = vpop.xlane.xlu1 %698 }
 0x383   : > { %2916 = vrcp.f32 %v699_v16 }
 0x385   : > { %v2913_v17 = vpop.eup %2912 }
 0x386   : > { %v705_v24 = vpop.xlane.xlu1 %704  ;;  %v702_v32 = vpop.xlane.xlu0 %701  ;;  %v723_v33 = vmul.f32 %v2913_v17, %v2897_v37 }
 0x387   : > { %v2915_v20 = vpop.eup %2914  ;;  %2918 = vrcp.f32 %v702_v32 }
 0x388   : > { %v724_v34 = vmul.f32 %v2915_v20, %v2899_v46  ;;  %2920 = vrcp.f32 %v705_v24 }
 0x38a   : > { %v731_v23 = vpack.c.bf16 %v724_v34, %v723_v33  ;;  %v711_v31 = vpop.xlane.xlu1 %710 }
 0x38b   : > { %v708_v44 = vpop.xlane.xlu0 %707 }
 0x38c   : > { %2620 = vmatmul.mubr.msk.bf16.vlgmr.msra.gmra.mrb[12].mxu0 %vm642_vm7, %v731_v23  ;;  %2922 = vrcp.f32 %v708_v44 }
 0x38d   : > { %2630 = vmatpush3.bf16.msra.mxu0 %v3248_v30  ;;  %2631 = vmatprep.mubr.msk.bf16.mxu0 %vm3130_vm2, %v3128_v15  ;;  %2924 = vrcp.f32 %v711_v31  ;;  %v2917_v37 = vpop.eup %2916 }
 0x38e   : > { %2641 = vmatprep.subr.bf16.mxu0 %v3128_v15  ;;  %v2838_v21 = vpop.permute.xlu1 %2837  ;;  %v725_v50 = vmul.f32 %v2917_v37, %v2901_v54 }
 0x38f   : > { %v714_v29 = vpop.xlane.xlu0 %713  ;;  %v2840_v56 = vunpack.i.h.bf16 %v2838_v21  ;;  %v2839_v45 = vunpack.i.l.bf16 %v2838_v21 }
 0x390   : > { %2926 = vrcp.f32 %v714_v29 }
 0x391   : > { %v2919_v46 = vpop.eup %2918  ;;  %v992_v28 = vsel %vm372_vm3, 1.0, %v2840_v56  ;;  %v991_v52 = vsel %vm372_vm3, 1.0, %v2839_v45 }
 0x392   : > { %v726_v51 = vmul.f32 %v2919_v46, %v2905_v57  ;;  %v2921_v25 = vpop.eup %2920  ;;  %v2848_v53 = vpop.permute.xlu1 %2847  ;;  %v999_v10 = vpack.c.bf16 %v992_v28, %v991_v52 }
 0x393   : > { %v2843_v59 = vpop.permute.xlu0 %2842  ;;  %v727_v2 = vmul.f32 %v2921_v25, %v3403_v1  ;;  %v2850_v11 = vunpack.i.h.bf16 %v2848_v53  ;;  %v2849_v54 = vunpack.i.l.bf16 %v2848_v53 }
 0x394   : > { %v2845_v36 = vunpack.i.h.bf16 %v2843_v59  ;;  %v2844_v58 = vunpack.i.l.bf16 %v2843_v59  ;;  %v732_v60 = vpack.c.bf16 %v726_v51, %v725_v50  ;;  %v1007_v24 = vsel %vm3777_vm4, %v999_v10, 0 }
 0x395   : > { %v996_v32 = vsel %vm372_vm3, 1.0, %v2850_v11  ;;  %v995_v33 = vsel %vm372_vm3, 1.0, %v2849_v54 }
 0x396   : > { %v2923_v55 = vpop.eup %2922  ;;  %2626 = vmatmul.mubr.msk.bf16.vlgmr.msra.gmra.mrb[12].mxu1 %vm642_vm7, %v732_v60  ;;  %v994_v12 = vsel %vm372_vm3, 1.0, %v2845_v36  ;;  %v993_v16 = vsel %vm372_vm3, 1.0, %v2844_v58  ;;  %v2853_v20 = vpop.permute.xlu1 %2852 }
 0x397   : > { %v2925_v4 = vpop.eup %2924  ;;  %v728_v8 = vmul.f32 %v2923_v55, %v2909_v7  ;;  %2636 = vmatpush3.bf16.msra.mxu1 %v3244_v27  ;;  %2637 = vmatprep.mubr.msk.bf16.mxu1 %vm3130_vm2, %v3128_v15  ;;  %v1000_v34 = vpack.c.bf16 %v994_v12, %v993_v16  ;;  %v2855_v31 = vunpack.i.h.bf16 %v2853_v20  ;;  %v2854_v44 = vunpack.i.l.bf16 %v2853_v20 }
 0x398   : > { %2647 = vmatprep.subr.bf16.mxu1 %v3128_v15  ;;  %v729_v1 = vmul.f32 %v2925_v4, %v3408_v5  ;;  %v1001_v5 = vpack.c.bf16 %v996_v32, %v995_v33 }
 0x399   : > { %v733_v17 = vpack.c.bf16 %v728_v8, %v727_v2  ;;  %v998_v21 = vsel %vm372_vm3, 1.0, %v2855_v31  ;;  %v997_v29 = vsel %vm372_vm3, 1.0, %v2854_v44 }
 0x39a   : > { %v2927_v57 = vpop.eup %2926  ;;  %v1101_v37 = vsel %vm3777_vm4, %v1001_v5, 0  ;;  %v1002_v56 = vpack.c.bf16 %v998_v21, %v997_v29 }
 0x39b   : > { %v730_v7 = vmul.f32 %v2927_v57, %v3413_v9  ;;  %2632 = vmatmul.mubr.msk.bf16.vlgmr.msra.gmra.mrb[16].mxu0 %vm642_vm7, %v733_v17  ;;  %v1054_v9 = vsel %vm3777_vm4, %v1000_v34, 0 }
 0x39c   : > { %2642 = vmatpush3.bf16.xpose.msra.mxu0 %v1007_v24  ;;  %2643 = vmatprep.mubr.msk.bf16.mxu0 %vm3130_vm2, %v3128_v15  ;;  %v1148_v45 = vsel %vm3777_vm4, %v1002_v56, 0 }
 0x39d   : > { %v734_v23 = vpack.c.bf16 %v730_v7, %v729_v1  ;;  %2653 = vmatprep.subr.bf16.mxu0 %v3128_v15 }
 0x39f   : > { %2638 = vmatmul.mubr.msk.bf16.vlgmr.msra.gmra.mrb[16].mxu1 %vm642_vm7, %v734_v23 }
 0x3a0   : > { %2649 = vmatprep.mubr.msk.bf16.mxu1 %vm3130_vm2, %v3128_v15  ;;  %2648 = vmatpush3.bf16.xpose.msra.mxu1 %v1054_v9 }
 0x3a1   : > { %2659 = vmatprep.subr.bf16.mxu1 %v3128_v15 }
 0x3a3   : > { %2644 = vmatmul.mubr.msk.bf16.vlgmr.msra.gmra.mrb[20].mxu0 %vm3777_vm4, %v963_v43 }
 0x3a4   : > { %2654 = vmatpush3.bf16.xpose.msra.mxu0 %v1101_v37  ;;  %2655 = vmatprep.mubr.msk.bf16.mxu0 %vm3130_vm2, %v3128_v15 }
 0x3a5   : > { %2665 = vmatprep.subr.bf16.mxu0 %v3128_v15 }
 0x3a7   : > { %2650 = vmatmul.mubr.msk.bf16.vlgmr.msra.gmra.mrb[20].mxu1 %vm3777_vm4, %v964_v40 }
 0x3a8   : > { %2660 = vmatpush3.bf16.xpose.msra.mxu1 %v1148_v45  ;;  %2661 = vmatprep.mubr.msk.bf16.mxu1 %vm3130_vm2, %v3128_v15 }
 0x3a9   : > { %2671 = vmatprep.subr.bf16.mxu1 %v3128_v15 }
 0x3ab   : > { %2656 = vmatmul.mubr.msk.bf16.vlgmr.msra.gmra.mrb[24].mxu0 %vm3777_vm4, %v965_v6 }
 0x3ac   : > { %2667 = vmatprep.mubr.msk.bf16.mxu0 %vm3130_vm2, %v3128_v15 }
 0x3af   : > { %2662 = vmatmul.mubr.msk.bf16.vlgmr.msra.gmra.mrb[24].mxu1 %vm3777_vm4, %v966_v26 }
 0x3b0   : > { %2673 = vmatprep.mubr.msk.bf16.mxu1 %vm3130_vm2, %v3128_v15 }
 0x45f   : > { %v3480_v38 = vpop.f32.mrb[12].mxu0 }
 0x460   : > { %v2621_v39 = vpop.f32.mrb[13].mxu0 }
 0x461   : > { %v3482_v40 = vpop.f32.mrb[14].mxu0 }
 0x462   : > { %v2622_v41 = vpop.f32.mrb[15].mxu0 }
 0x469   : > { %v3484_v42 = vpop.f32.mrb[12].mxu1 }
 0x46a   : > { %v2627_v43 = vpop.f32.mrb[13].mxu1 }
 0x46b   : > { %v3486_v61 = vpop.f32.mrb[14].mxu1 }
 0x46c   : > { %v2628_v0 = vpop.f32.mrb[15].mxu1 }
 0x46e   : > { %v3488_v6 = vpop.f32.mrb[16].mxu0 }
 0x46f   : > { %v2633_v14 = vpop.f32.mrb[17].mxu0 }
 0x470   : > { %v3490_v18 = vpop.f32.mrb[18].mxu0 }
 0x471   : > { %v2634_v26 = vpop.f32.mrb[19].mxu0 }
 0x472   : > { %v3492_v46 = vpop.f32.mrb[16].mxu1 }
 0x473   : > { %v2639_v59 = vpop.f32.mrb[17].mxu1 }
 0x474   : > { %v3494_v50 = vpop.f32.mrb[18].mxu1 }
 0x475   : > { %v2640_v51 = vpop.f32.mrb[19].mxu1 }
 0x476   : > { %v1043_v25 = vpop.f32.mrb[20].mxu0 }
 0x477   : > { %vm1191_vm0 = vcmp.gt.f32.partialorder %v1043_v25, 0.0  ;;  %v1199_v28 = vmul.f32 0.2, %v1043_v25  ;;  %v2645_v52 = vpop.f32.mrb[21].mxu0 }
 0x478   : > { %v1046_v53 = vpop.f32.mrb[22].mxu0 }
 0x479   : > { %vm1192_vm8 = vcmp.gt.f32.partialorder %v1046_v53, 0.0  ;;  %v1200_v36 = vmul.f32 0.2, %v1046_v53  ;;  %v2646_v58 = vpop.f32.mrb[23].mxu0  ;;  %v1207_v60 = vsel %vm1191_vm0, %v1043_v25, %v1199_v28 }
 0x47a   : > { %v1215_v55 = vsel %vm236_vm6, %v1207_v60, -9e+15  ;;  %v1090_v4 = vpop.f32.mrb[20].mxu1 }
 0x47b   : > { %v1223_v2 = vsel %vm642_vm7, %v1215_v55, -inf  ;;  %v1208_v8 = vsel %vm1192_vm8, %v1046_v53, %v1200_v36  ;;  %vm1193_vm11 = vcmp.gt.f32.partialorder %v1090_v4, 0.0  ;;  %v1201_v10 = vmul.f32 0.2, %v1090_v4  ;;  %v2651_v11 = vpop.f32.mrb[21].mxu1 }
 0x47c   : > { %1224 = vmax.xlane.f32.xlu0 %v1223_v2  ;;  %v1093_v54 = vpop.f32.mrb[22].mxu1  ;;  %v1216_v57 = vsel %vm237_vm9, %v1208_v8, -9e+15 }
 0x47d   : > { %vm1194_vm4 = vcmp.gt.f32.partialorder %v1093_v54, 0.0  ;;  %v1202_v12 = vmul.f32 0.2, %v1093_v54  ;;  %v2652_v16 = vpop.f32.mrb[23].mxu1  ;;  %v1226_v1 = vsel %vm642_vm7, %v1216_v57, -inf  ;;  %v1209_v24 = vsel %vm1193_vm11, %v1090_v4, %v1201_v10 }
 0x47e   : > { %v1137_v17 = vpop.f32.mrb[24].mxu0  ;;  %1227 = vmax.xlane.f32.xlu1 %v1226_v1  ;;  %v1217_v32 = vsel %vm238_vm12, %v1209_v24, -9e+15 }
 0x47f   : > { %vm1195_vm0 = vcmp.gt.f32.partialorder %v1137_v17, 0.0  ;;  %v1203_v7 = vmul.f32 0.2, %v1137_v17  ;;  %v2657_v20 = vpop.f32.mrb[25].mxu0  ;;  %v1210_v34 = vsel %vm1194_vm4, %v1093_v54, %v1202_v12  ;;  %v1229_v23 = vsel %vm642_vm7, %v1217_v32, -inf }
 0x480   : > { %v1140_v33 = vpop.f32.mrb[26].mxu0  ;;  %1230 = vmax.xlane.f32.xlu0 %v1229_v23  ;;  %v1218_v9 = vsel %vm239_vm14, %v1210_v34, -9e+15 }
 0x481   : > { %vm1196_vm8 = vcmp.gt.f32.partialorder %v1140_v33, 0.0  ;;  %v1204_v31 = vmul.f32 0.2, %v1140_v33  ;;  %v2658_v44 = vpop.f32.mrb[27].mxu0  ;;  %v1211_v5 = vsel %vm1195_vm0, %v1137_v17, %v1203_v7  ;;  %v1232_v43 = vsel %vm642_vm7, %v1218_v9, -inf }
 0x482   : > { %v1219_v21 = vsel %vm240_vm13, %v1211_v5, -9e+15  ;;  %v1184_v29 = vpop.f32.mrb[24].mxu1 }
 0x483   : > { %v1235_v37 = vsel %vm642_vm7, %v1219_v21, -inf  ;;  %v1212_v56 = vsel %vm1196_vm8, %v1140_v33, %v1204_v31  ;;  %vm1197_vm11 = vcmp.gt.f32.partialorder %v1184_v29, 0.0  ;;  %v1205_v45 = vmul.f32 0.2, %v1184_v29  ;;  %v2663_v39 = vpop.f32.mrb[25].mxu1 }
 0x484   : > { %1236 = vmax.xlane.f32.xlu1 %v1235_v37  ;;  %v1187_v41 = vpop.f32.mrb[26].mxu1  ;;  %1233 = vmax.xlane.f32.xlu0 %v1232_v43  ;;  %v1220_v59 = vsel %vm241_vm5, %v1212_v56, -9e+15 }
 0x485   : > { %vm1198_vm4 = vcmp.gt.f32.partialorder %v1187_v41, 0.0  ;;  %v1206_v0 = vmul.f32 0.2, %v1187_v41  ;;  %v2664_v14 = vpop.f32.mrb[27].mxu1  ;;  %v1213_v26 = vsel %vm1197_vm11, %v1184_v29, %v1205_v45  ;;  %v1238_v52 = vsel %vm642_vm7, %v1220_v59, -inf }
 0x486   : > { %v1221_v51 = vsel %vm3779_vm10, %v1213_v26, -9e+15 }
 0x487   : > { %v1241_v25 = vsel %vm642_vm7, %v1221_v51, -inf  ;;  %v1214_v28 = vsel %vm1198_vm4, %v1187_v41, %v1206_v0 }
 0x488   : > { %1242 = vmax.xlane.f32.xlu1 %v1241_v25  ;;  %1239 = vmax.xlane.f32.xlu0 %v1238_v52  ;;  %v1222_v53 = vsel %vm3778_vm15, %v1214_v28, -9e+15 }
 0x489   : > { %v1244_v36 = vsel %vm642_vm7, %v1222_v53, -inf }
 0x48c   : > { %1245 = vmax.xlane.f32.xlu0 %v1244_v36 }
 0x499   : > { %1316 = vrot.lane.b32.xlu1 %v3233_v22, %s3133_s14 }
 0x509   : > { %v1225_v58 = vpop.xlane.xlu0 %1224 }
 0x50a   : > { %v1247_v60 = vsub.f32 %v1215_v55, %v1225_v58 }
 0x50b   : > { %v1228_v2 = vpop.xlane.xlu1 %1227 }
 0x50c   : > { %v1255_v4 = vmul.f32 1.442695, %v1247_v60  ;;  %v1248_v8 = vsub.f32 %v1216_v57, %v1228_v2 }
 0x50d   : > { %v1231_v10 = vpop.xlane.xlu0 %1230 }
 0x50e   : > { %2928 = vpow2.f32 %v1255_v4  ;;  %v1257_v11 = vmul.f32 1.442695, %v1248_v8  ;;  %v1249_v54 = vsub.f32 %v1217_v32, %v1231_v10 }
 0x510   : > { %2930 = vpow2.f32 %v1257_v11  ;;  %v1259_v16 = vmul.f32 1.442695, %v1249_v54 }
 0x511   : > { %v1237_v12 = vpop.xlane.xlu1 %1236  ;;  %v1234_v1 = vpop.xlane.xlu0 %1233 }
 0x512   : > { %v1251_v17 = vsub.f32 %v1219_v21, %v1237_v12  ;;  %2932 = vpow2.f32 %v1259_v16  ;;  %v1250_v7 = vsub.f32 %v1218_v9, %v1234_v1 }
 0x514   : > { %v1263_v20 = vmul.f32 1.442695, %v1251_v17  ;;  %v1261_v24 = vmul.f32 1.442695, %v1250_v7 }
 0x515   : > { %v1243_v22 = vpop.xlane.xlu1 %1242  ;;  %v1240_v55 = vpop.xlane.xlu0 %1239 }
 0x516   : > { %2934 = vpow2.f32 %v1263_v20  ;;  %v1253_v33 = vsub.f32 %v1221_v51, %v1243_v22  ;;  %v1252_v23 = vsub.f32 %v1220_v59, %v1240_v55 }
 0x517   : > { %2936 = vpow2.f32 %v1261_v24 }
 0x518   : > { %v2929_v34 = vpop.eup %2928  ;;  %v1267_v57 = vmul.f32 1.442695, %v1253_v33  ;;  %v1265_v32 = vmul.f32 1.442695, %v1252_v23 }
 0x519   : > { %v1271_v31 = vsel %vm642_vm7, %v2929_v34, 0.0  ;;  %v1317_v44 = vpop.permute.xlu1 %1316  ;;  %v1246_v5 = vpop.xlane.xlu0 %1245 }
 0x51a   : > { %1272 = vadd.xlane.f32.xlu1 %v1271_v31  ;;  %2938 = vpow2.f32 %v1267_v57  ;;  %2666 = vmatpush3.bf16.msra.mxu0 %v1317_v44  ;;  %v2931_v21 = vpop.eup %2930  ;;  %v1254_v9 = vsub.f32 %v1222_v53, %v1246_v5 }
 0x51b   : > { %2940 = vpow2.f32 %v1265_v32  ;;  %2677 = vmatprep.subr.bf16.mxu0 %v3128_v15  ;;  %v1274_v29 = vsel %vm642_vm7, %v2931_v21, 0.0 }
 0x51c   : > { %v2933_v37 = vpop.eup %2932  ;;  %v1269_v56 = vmul.f32 1.442695, %v1254_v9  ;;  %1275 = vadd.xlane.f32.xlu0 %v1274_v29 }
 0x51d   : > { %v1277_v45 = vsel %vm642_vm7, %v2933_v37, 0.0 }
 0x51e   : > { %2942 = vpow2.f32 %v1269_v56  ;;  %1278 = vadd.xlane.f32.xlu1 %v1277_v45 }
 0x520   : > { %v2935_v39 = vpop.eup %2934 }
 0x521   : > { %v1283_v41 = vsel %vm642_vm7, %v2935_v39, 0.0  ;;  %v2937_v43 = vpop.eup %2936 }
 0x522   : > { %v1280_v0 = vsel %vm642_vm7, %v2937_v43, 0.0  ;;  %1284 = vadd.xlane.f32.xlu1 %v1283_v41 }
 0x523   : > { %1281 = vadd.xlane.f32.xlu0 %v1280_v0 }
 0x524   : > { %v2939_v14 = vpop.eup %2938 }
 0x525   : > { %v2941_v26 = vpop.eup %2940  ;;  %v1289_v59 = vsel %vm642_vm7, %v2939_v14, 0.0 }
 0x526   : > { %v1286_v51 = vsel %vm642_vm7, %v2941_v26, 0.0  ;;  %1290 = vadd.xlane.f32.xlu1 %v1289_v59 }
 0x527   : > { %1287 = vadd.xlane.f32.xlu0 %v1286_v51 }
 0x528   : > { %v2943_v25 = vpop.eup %2942 }
 0x529   : > { %v1292_v28 = vsel %vm642_vm7, %v2943_v25, 0.0 }
 0x52b   : > { %1293 = vadd.xlane.f32.xlu0 %v1292_v28 }
 0x537   : > { %1412 = vrot.lane.b32.xlu1 %v3248_v30, %s3133_s14 }
 0x53b   : > { %1460 = vrot.lane.b32.xlu1 %v3244_v27, %s3133_s14 }
 0x541   : > { %1364 = vrot.lane.b32.xlu0 %v3229_v19, %s3133_s14  ;;  %s3068_s14 = sshll.u32 %s3136_s13, 4  ;;  %s3069_s14 = int_to_ptr.vmem [resolvable:$false] %s3068_s14 }
 0x542   : > { %s3070_s20 = scalar_lea.vmem %s3069_s14, 2048  ;;  %p3071_p0 = scmp.lt.s32.totalorder %s3726_s8, %s3069_s14 }
 0x543   : > { %p3072_p1 = scmp.lt.s32.totalorder %s3070_s20, %s3064_s12 }
 0x545   : > { %p3073_p2 = por %p3072_p1, %p3071_p0 }
 0x547   : > { %p3074_p3 = pnand %p3073_p2, %p3067_p13 }
 0x5a7   : > { %v1273_v52 = vpop.xlane.xlu1 %1272 }
 0x5a8   : > { %2944 = vrcp.f32 %v1273_v52 }
 0x5a9   : > { %v1276_v53 = vpop.xlane.xlu0 %1275 }
 0x5aa   : > { %2946 = vrcp.f32 %v1276_v53 }
 0x5ab   : > { %v1279_v36 = vpop.xlane.xlu1 %1278 }
 0x5ac   : > { %2948 = vrcp.f32 %v1279_v36 }
 0x5af   : > { %v1285_v58 = vpop.xlane.xlu1 %1284 }
 0x5b0   : > { %v1282_v60 = vpop.xlane.xlu0 %1281 }
 0x5b1   : > { %2950 = vrcp.f32 %v1282_v60  ;;  %v1591_v60 = vld [vmem:[%s3775_s3] sm:$0xff] }
 0x5b2   : > { %v2945_v4 = vpop.eup %2944  ;;  %2952 = vrcp.f32 %v1285_v58 }
 0x5b3   : > { %v1291_v2 = vpop.xlane.xlu1 %1290  ;;  %v1303_v10 = vmul.f32 %v2945_v4, %v2929_v34 }
 0x5b4   : > { %v1288_v8 = vpop.xlane.xlu0 %1287  ;;  %v2947_v30 = vpop.eup %2946 }
 0x5b5   : > { %v1304_v11 = vmul.f32 %v2947_v30, %v2931_v21  ;;  %2954 = vrcp.f32 %v1288_v8  ;;  %v1592_v8 = vld [vmem:[%s3775_s3 + $0x8] sm:$0xff] }
 0x5b6   : > { %2956 = vrcp.f32 %v1291_v2  ;;  %v2949_v12 = vpop.eup %2948 }
 0x5b7   : > { %v1413_v27 = vpop.permute.xlu1 %1412  ;;  %v1311_v54 = vpack.c.bf16 %v1304_v11, %v1303_v10  ;;  %v1305_v1 = vmul.f32 %v2949_v12, %v2933_v37 }
 0x5b8   : > { %v1294_v19 = vpop.xlane.xlu0 %1293 }
 0x5b9   : > { %2958 = vrcp.f32 %v1294_v19  ;;  %2668 = vmatmul.mubr.msk.bf16.vlgmr.msra.gmra.mrb[28].mxu0 %vm642_vm7, %v1311_v54  ;;  %v1593_v19 = vpack.c.bf16 %v1592_v8, %v1591_v60 }
 0x5ba   : > { %2678 = vmatpush3.bf16.msra.mxu0 %v1413_v27  ;;  %2679 = vmatprep.mubr.msk.bf16.mxu0 %vm3130_vm2, %v3128_v15 }
 0x5bb   : > { %v2951_v16 = vpop.eup %2950  ;;  %v1461_v23 = vpop.permute.xlu1 %1460  ;;  %2689 = vmatprep.subr.bf16.mxu0 %v1593_v19 }
 0x5bc   : > { %v1365_v17 = vpop.permute.xlu0 %1364  ;;  %v1306_v7 = vmul.f32 %v2951_v16, %v2937_v43  ;;  %v2953_v20 = vpop.eup %2952 }
 0x5bd   : > { %2672 = vmatpush3.bf16.msra.mxu1 %v1365_v17  ;;  %v1307_v55 = vmul.f32 %v2953_v20, %v2935_v39 }
 0x5be   : > { %2683 = vmatprep.subr.bf16.mxu1 %v3128_v15  ;;  %v1312_v24 = vpack.c.bf16 %v1306_v7, %v1305_v1 }
 0x5bf   : > { %v2955_v22 = vpop.eup %2954 }
 0x5c0   : > { %v2957_v33 = vpop.eup %2956  ;;  %v1308_v34 = vmul.f32 %v2955_v22, %v2941_v26  ;;  %2674 = vmatmul.mubr.msk.bf16.vlgmr.msra.gmra.mrb[28].mxu1 %vm642_vm7, %v1312_v24 }
 0x5c1   : > { %2684 = vmatpush3.bf16.msra.mxu1 %v1461_v23  ;;  %2685 = vmatprep.mubr.msk.bf16.mxu1 %vm3130_vm2, %v3128_v15  ;;  %v1309_v32 = vmul.f32 %v2957_v33, %v2939_v14 }
 0x5c2   : > { %v1313_v31 = vpack.c.bf16 %v1308_v34, %v1307_v55  ;;  %2699 = vmatprep.subr.bf16.mxu1 %v3128_v15 }
 0x5c3   : > { %v2959_v57 = vpop.eup %2958 }
 0x5c4   : > { %v1310_v44 = vmul.f32 %v2959_v57, %v2943_v25  ;;  %2680 = vmatmul.mubr.msk.bf16.vlgmr.msra.gmra.mrb[32].mxu0 %vm642_vm7, %v1313_v31 }
 0x5c5   : > { %2690 = vmatpush3.bf16.msra.mxu0 %v1593_v19 }
 0x5c6   : > { %v1314_v5 = vpack.c.bf16 %v1310_v44, %v1309_v32  ;;  %2711 = vmatprep.subr.bf16.mxu0 %v3128_v15 }
 0x5c8   : > { %2686 = vmatmul.mubr.msk.bf16.vlgmr.msra.gmra.mrb[32].mxu1 %vm642_vm7, %v1314_v5 }
 0x5c9   : > { %2701 = vmatprep.mubr.msk.bf16.mxu1 %vm3130_vm2, %v3128_v15 }
 0x68c   : > { %v1356_v21 = vpop.f32.mrb[28].mxu0 }
 0x68d   : > { %v1515_v9 = vmul.f32 1.442695, %v1356_v21  ;;  %v2669_v29 = vpop.f32.mrb[29].mxu0  ;;  %vm1507_vm0 = vcmp.gt.f32.partialorder %v1356_v21, 0.0 }
 0x68e   : > { %v1359_v37 = vpop.f32.mrb[30].mxu0 }
 0x68f   : > { %2960 = vpow2.f32 %v1515_v9  ;;  %v1517_v56 = vmul.f32 1.442695, %v1359_v37  ;;  %v2670_v45 = vpop.f32.mrb[31].mxu0  ;;  %vm1508_vm8 = vcmp.gt.f32.partialorder %v1359_v37, 0.0 }
 0x691   : > { %2962 = vpow2.f32 %v1517_v56 }
 0x693   : > { %v1404_v39 = vpop.f32.mrb[28].mxu1 }
 0x694   : > { %v1519_v41 = vmul.f32 1.442695, %v1404_v39  ;;  %v2675_v43 = vpop.f32.mrb[29].mxu1  ;;  %vm1509_vm11 = vcmp.gt.f32.partialorder %v1404_v39, 0.0 }
 0x695   : > { %v1407_v0 = vpop.f32.mrb[30].mxu1  ;;  %v923_v43 = vmul.f32 1.442695, %v3480_v38 }
 0x696   : > { %2964 = vpow2.f32 %v1519_v41  ;;  %v1521_v14 = vmul.f32 1.442695, %v1407_v0  ;;  %v2676_v26 = vpop.f32.mrb[31].mxu1  ;;  %vm1510_vm4 = vcmp.gt.f32.partialorder %v1407_v0, 0.0 }
 0x697   : > { %v1452_v59 = vpop.f32.mrb[32].mxu0  ;;  %v929_v26 = vmul.f32 1.442695, %v3486_v61 }
 0x698   : > { %2966 = vpow2.f32 %v1521_v14  ;;  %v1523_v51 = vmul.f32 1.442695, %v1452_v59  ;;  %v2681_v25 = vpop.f32.mrb[33].mxu0  ;;  %v927_v14 = vmul.f32 1.442695, %v3484_v42 }
 0x699   : > { %v2961_v28 = vpop.eup %2960  ;;  %v1455_v52 = vpop.f32.mrb[34].mxu0 }
 0x69a   : > { %v2487_v53 = vadd.f32 -1.0, %v2961_v28  ;;  %2968 = vpow2.f32 %v1523_v51  ;;  %v1525_v36 = vmul.f32 1.442695, %v1455_v52  ;;  %v2682_v58 = vpop.f32.mrb[35].mxu0  ;;  %v933_v51 = vmul.f32 1.442695, %v3490_v18 }
 0x69b   : > { %v2963_v4 = vpop.eup %2962  ;;  %v1500_v2 = vpop.f32.mrb[32].mxu1 }
 0x69c   : > { %v2488_v30 = vadd.f32 -1.0, %v2963_v4  ;;  %2970 = vpow2.f32 %v1525_v36  ;;  %v2687_v10 = vpop.f32.mrb[33].mxu1  ;;  %v1527_v11 = vmul.f32 1.442695, %v1500_v2  ;;  %v1539_v54 = vsel %vm1507_vm0, %v1356_v21, %v2487_v53 }
 0x69d   : > { %v1503_v27 = vpop.f32.mrb[34].mxu1  ;;  %vm1511_vm0 = vcmp.gt.f32.partialorder %v1452_v59, 0.0  ;;  %vm1513_vm15 = vcmp.gt.f32.partialorder %v1500_v2, 0.0  ;;  %v937_v53 = vmul.f32 1.442695, %v3494_v50 }
 0x69e   : > { %v1540_v12 = vsel %vm1508_vm8, %v1359_v37, %v2488_v30  ;;  %v1529_v16 = vmul.f32 1.442695, %v1503_v27  ;;  %v2688_v17 = vpop.f32.mrb[35].mxu1  ;;  %2972 = vpow2.f32 %v1527_v11  ;;  %vm1512_vm8 = vcmp.gt.f32.partialorder %v1455_v52, 0.0 }
 0x69f   : > { %v2856_v1 = vpack.i.bf16 %v1540_v12, %v1539_v54  ;;  %vm1514_vm10 = vcmp.gt.f32.partialorder %v1503_v27, 0.0 }
 0x6a0   : > { %v2965_v7 = vpop.eup %2964  ;;  %2974 = vpow2.f32 %v1529_v16 }
 0x6a1   : > { %v2489_v20 = vadd.f32 -1.0, %v2965_v7  ;;  %2857 = vrot.lane.b32.xlu0 %v2856_v1, %s3134_s28  ;;  %2976 = vpow2.f32 %v923_v43 }
 0x6a2   : > { %v2967_v24 = vpop.eup %2966 }
 0x6a3   : > { %v2490_v22 = vadd.f32 -1.0, %v2967_v24  ;;  %v1541_v55 = vsel %vm1509_vm11, %v1404_v39, %v2489_v20  ;;  %vm917_vm11 = vcmp.gt.f32.partialorder %v3484_v42, 0.0 }
 0x6a4   : > { %v2969_v33 = vpop.eup %2968 }
 0x6a5   : > { %v1542_v34 = vsel %vm1510_vm4, %v1407_v0, %v2490_v22  ;;  %v2491_v23 = vadd.f32 -1.0, %v2969_v33  ;;  %v925_v0 = vmul.f32 1.442695, %v3482_v40  ;;  %vm918_vm4 = vcmp.gt.f32.partialorder %v3486_v61, 0.0 }
 0x6a6   : > { %v2971_v57 = vpop.eup %2970  ;;  %v2861_v31 = vpack.i.bf16 %v1542_v34, %v1541_v55 }
 0x6a7   : > { %v2492_v32 = vadd.f32 -1.0, %v2971_v57  ;;  %v1543_v5 = vsel %vm1511_vm0, %v1452_v59, %v2491_v23  ;;  %2978 = vpow2.f32 %v925_v0  ;;  %v931_v59 = vmul.f32 1.442695, %v3488_v6 }
 0x6a8   : > { %2862 = vrot.lane.b32.xlu1 %v2861_v31, %s3134_s28  ;;  %v2973_v44 = vpop.eup %2972  ;;  %2980 = vpow2.f32 %v927_v14  ;;  %vm919_vm0 = vcmp.gt.f32.partialorder %v3488_v6, 0.0 }
 0x6a9   : > { %v1544_v21 = vsel %vm1512_vm8, %v1455_v52, %v2492_v32  ;;  %v2493_v29 = vadd.f32 -1.0, %v2973_v44  ;;  %2982 = vpow2.f32 %v929_v26  ;;  %v935_v52 = vmul.f32 1.442695, %v3492_v46 }
 0x6aa   : > { %v2975_v9 = vpop.eup %2974  ;;  %v2866_v37 = vpack.i.bf16 %v1544_v21, %v1543_v5  ;;  %2984 = vpow2.f32 %v931_v59  ;;  %vm920_vm8 = vcmp.gt.f32.partialorder %v3490_v18, 0.0 }
 0x6ab   : > { %v2494_v56 = vadd.f32 -1.0, %v2975_v9  ;;  %v1545_v45 = vsel %vm1513_vm15, %v1500_v2, %v2493_v29  ;;  %v2977_v25 = vpop.eup %2976  ;;  %2986 = vpow2.f32 %v933_v51  ;;  %vm916_vm15 = vcmp.gt.f32.partialorder %v3482_v40, 0.0 }
 0x6ac   : > { %2867 = vrot.lane.b32.xlu0 %v2866_v37, %s3134_s28  ;;  %v2471_v36 = vadd.f32 -1.0, %v2977_v25  ;;  %2988 = vpow2.f32 %v935_v52 }
 0x6ad   : > { %v1546_v39 = vsel %vm1514_vm10, %v1503_v27, %v2494_v56  ;;  %2990 = vpow2.f32 %v937_v53  ;;  %vm915_vm10 = vcmp.gt.f32.partialorder %v3480_v38, 0.0 }
 0x6ae   : > { %v2871_v41 = vpack.i.bf16 %v1546_v39, %v1545_v45  ;;  %v947_v10 = vsel %vm915_vm10, %v3480_v38, %v2471_v36  ;;  %vm921_vm10 = vcmp.gt.f32.partialorder %v3492_v46, 0.0 }
 0x6b0   : > { %2872 = vrot.lane.b32.xlu1 %v2871_v41, %s3134_s28 }
 0x6b1   : > { %v2979_v28 = vpop.eup %2978 }
 0x6b2   : > { %v2472_v58 = vadd.f32 -1.0, %v2979_v28  ;;  %v2981_v4 = vpop.eup %2980 }
 0x6b3   : > { %v2983_v30 = vpop.eup %2982  ;;  %v2473_v16 = vadd.f32 -1.0, %v2981_v4 }
 0x6b4   : > { %v948_v11 = vsel %vm916_vm15, %v3482_v40, %v2472_v58  ;;  %v2985_v12 = vpop.eup %2984  ;;  %v2474_v17 = vadd.f32 -1.0, %v2983_v30  ;;  %vm922_vm15 = vcmp.gt.f32.partialorder %v3494_v50, 0.0 }
 0x6b5   : > { %v2987_v1 = vpop.eup %2986  ;;  %v949_v40 = vsel %vm917_vm11, %v3484_v42, %v2473_v16  ;;  %v2475_v33 = vadd.f32 -1.0, %v2985_v12 }
 0x6b6   : > { %v2989_v24 = vpop.eup %2988  ;;  %v950_v22 = vsel %vm918_vm4, %v3486_v61, %v2474_v17  ;;  %v2476_v55 = vadd.f32 -1.0, %v2987_v1 }
 0x6b7   : > { %v2991_v34 = vpop.eup %2990  ;;  %v951_v21 = vsel %vm919_vm0, %v3488_v6, %v2475_v33  ;;  %v2477_v61 = vadd.f32 -1.0, %v2989_v24 }
 0x6b8   : > { %v952_v42 = vsel %vm920_vm8, %v3490_v18, %v2476_v55  ;;  %v2478_v9 = vadd.f32 -1.0, %v2991_v34 }
 0x6b9   : > { %v953_v6 = vsel %vm921_vm10, %v3492_v46, %v2477_v61 }
 0x6ba   : > { %v954_v18 = vsel %vm922_vm15, %v3494_v50, %v2478_v9 }
 0x713   : > { %v2858_v60 = vpop.permute.xlu0 %2857 }
 0x714   : > { %v2860_v2 = vunpack.i.h.bf16 %v2858_v60  ;;  %v2859_v8 = vunpack.i.l.bf16 %v2858_v60 }
 0x716   : > { %v1580_v27 = vsel %vm258_vm1, %v948_v11, %v2860_v2  ;;  %v1579_v19 = vsel %vm258_vm1, %v947_v10, %v2859_v8 }
 0x717   : > { %v1587_v54 = vpack.c.bf16 %v1580_v27, %v1579_v19 }
 0x719   : > { %2691 = vmatprep.mubr.msk.bf16.mxu0 %vm642_vm7, %v1587_v54 }
 0x71a   : > { %v2863_v7 = vpop.permute.xlu1 %2862 }
 0x71b   : > { %v2865_v20 = vunpack.i.h.bf16 %v2863_v7  ;;  %v2864_v38 = vunpack.i.l.bf16 %v2863_v7 }
 0x71d   : > { %v1582_v23 = vsel %vm258_vm1, %v950_v22, %v2865_v20  ;;  %v1581_v57 = vsel %vm258_vm1, %v949_v40, %v2864_v38 }
 0x71e   : > { %v1588_v31 = vpack.c.bf16 %v1582_v23, %v1581_v57  ;;  %v2868_v32 = vpop.permute.xlu0 %2867 }
 0x71f   : > { %v2870_v44 = vunpack.i.h.bf16 %v2868_v32  ;;  %v2869_v5 = vunpack.i.l.bf16 %v2868_v32 }
 0x720   : > { %2692 = vmatmul.mubr.msk.bf16.vlgmr.msra.gmra.mrb[36].mxu0 %vm642_vm7, %v1588_v31 }
 0x721   : > { %v1584_v29 = vsel %vm258_vm1, %v952_v42, %v2870_v44  ;;  %v1583_v37 = vsel %vm258_vm1, %v951_v21, %v2869_v5 }
 0x722   : > { %v1589_v56 = vpack.c.bf16 %v1584_v29, %v1583_v37  ;;  %v2873_v45 = vpop.permute.xlu1 %2872 }
 0x723   : > { %v2875_v39 = vunpack.i.h.bf16 %v2873_v45  ;;  %v2874_v41 = vunpack.i.l.bf16 %v2873_v45 }
 0x724   : > { %2695 = vmatprep.mubr.msk.bf16.mxu0 %vm642_vm7, %v1589_v56 }
 0x725   : > { %v1586_v43 = vsel %vm258_vm1, %v954_v18, %v2875_v39  ;;  %v1585_v0 = vsel %vm258_vm1, %v953_v6, %v2874_v41  ;;  %vm3782_vm1 = vcmask 15360  }
 0x726   : > { %v1590_v14 = vpack.c.bf16 %v1586_v43, %v1585_v0  ;;  %vm3783_vm11 = vmmov %vm3782_vm1 }
 0x727   : > { %vm3784_vm4 = vmmov %vm3782_vm1 }
 0x728   : > { %2696 = vmatmul.mubr.msk.bf16.gmra.mrb[40].mxu0 %vm642_vm7, %v1590_v14  ;;  %vm3785_vm0 = vmmov %vm3782_vm1 }
 0x729   : > { %2713 = vmatprep.mubr.msk.bf16.mxu0 %vm3130_vm2, %v3128_v15  ;;  %vm3786_vm8 = vmmov %vm3785_vm0 }
 0x72a   : > { %vm3787_vm10 = vmmov %vm3785_vm0 }
 0x72b   : > { %vm3788_vm15 = vmmov %vm3785_vm0 }
 0x7f3   : > { %v3598_v26 = vpop.f32.mrb[36].mxu0 }
 0x7f4   : > { %v3600_v59 = vpop.f32.mrb[37].mxu0 }
 0x7f5   : > { %v3602_v51 = vpop.f32.mrb[38].mxu0 }
 0x7f6   : > { %v2881_v46 = vpack.i.bf16 %v3602_v51, %v3598_v26  ;;  %v2040_v50 = vpack.c.bf16 %v3602_v51, %v3598_v26  ;;  %v3608_v25 = vpop.f32.mrb[39].mxu0 }
 0x7f7   : > { %v2876_v28 = vpack.i.bf16 %v3608_v25, %v3600_v59  ;;  %v2039_v52 = vpack.c.bf16 %v3608_v25, %v3600_v59 }
 0x7f8   : > { %2882 = vrot.lane.b32.xlu1 %v2881_v46, %s3135_s29 }
 0x7f9   : > { %2877 = vrot.lane.b32.xlu0 %v2876_v28, %s3135_s29 }
 0x7fb   : > { %v3614_v53 = vpop.f32.mrb[40].mxu0 }
 0x7fc   : > { %v3616_v36 = vpop.f32.mrb[41].mxu0 }
 0x7fd   : > { %v3618_v58 = vpop.f32.mrb[42].mxu0 }
 0x7fe   : > { %v2891_v60 = vpack.i.bf16 %v3618_v58, %v3614_v53  ;;  %v2042_v4 = vpack.c.bf16 %v3618_v58, %v3614_v53  ;;  %v3624_v2 = vpop.f32.mrb[43].mxu0 }
 0x7ff   : > { %v2886_v8 = vpack.i.bf16 %v3624_v2, %v3616_v36  ;;  %v2041_v30 = vpack.c.bf16 %v3624_v2, %v3616_v36 }
 0x800   : > { %2892 = vrot.lane.b32.xlu1 %v2891_v60, %s3135_s29 }
 0x801   : > { %2887 = vrot.lane.b32.xlu0 %v2886_v8, %s3135_s29 }
 0x86a   : > { %v2883_v11 = vpop.permute.xlu1 %2882 }
 0x86b   : > { %v2878_v10 = vpop.permute.xlu0 %2877  ;;  %v2885_v12 = vunpack.i.h.bf16 %v2883_v11  ;;  %v2884_v16 = vunpack.i.l.bf16 %v2883_v11 }
 0x86c   : > { %v2880_v27 = vunpack.i.h.bf16 %v2878_v10  ;;  %v2879_v19 = vunpack.i.l.bf16 %v2878_v10 }
 0x86d   : > { %v1718_v20 = vsel %vm372_vm3, 1.0, %v2885_v12  ;;  %v1717_v38 = vsel %vm372_vm3, 1.0, %v2884_v16  ;;  %v1706_v37 = vsel %vm372_vm3, %v2885_v12, 1.0  ;;  %v1705_v56 = vsel %vm372_vm3, %v2884_v16, 1.0 }
 0x86e   : > { %v1716_v54 = vsel %vm372_vm3, 1.0, %v2880_v27  ;;  %v1715_v17 = vsel %vm372_vm3, 1.0, %v2879_v19  ;;  %v1704_v55 = vsel %vm372_vm3, %v2880_v27, 1.0  ;;  %v1703_v34 = vsel %vm372_vm3, %v2879_v19, 1.0 }
 0x86f   : > { %v1723_v1 = vpack.c.bf16 %v1716_v54, %v1715_v17  ;;  %v1724_v23 = vpack.c.bf16 %v1718_v20, %v1717_v38  ;;  %v1711_v5 = vpack.c.bf16 %v1704_v55, %v1703_v34  ;;  %v1712_v6 = vpack.c.bf16 %v1706_v37, %v1705_v56 }
 0x871   : > { %v1731_v7 = vsel %vm3782_vm1, %v1723_v1, 0  ;;  %v1778_v42 = vsel %vm3784_vm4, %v1724_v23, 0  ;;  %vm3789_vm1 = vmmov %vm3785_vm0 }
 0x872   : > { %2700 = vmatpush3.bf16.xpose.msra.mxu1 %v1731_v7  ;;  %v2893_v40 = vpop.permute.xlu1 %2892 }
 0x873   : > { %v2888_v24 = vpop.permute.xlu0 %2887  ;;  %2705 = vmatprep.subr.bf16.mxu1 %v3128_v15  ;;  %v2895_v31 = vunpack.i.h.bf16 %v2893_v40  ;;  %v2894_v32 = vunpack.i.l.bf16 %v2893_v40 }
 0x874   : > { %v2890_v22 = vunpack.i.h.bf16 %v2888_v24  ;;  %v2889_v33 = vunpack.i.l.bf16 %v2888_v24 }
 0x875   : > { %v1722_v9 = vsel %vm372_vm3, 1.0, %v2895_v31  ;;  %v1721_v29 = vsel %vm372_vm3, 1.0, %v2894_v32  ;;  %v1710_v0 = vsel %vm372_vm3, %v2895_v31, 1.0  ;;  %v1709_v14 = vsel %vm372_vm3, %v2894_v32, 1.0 }
 0x876   : > { %v1720_v57 = vsel %vm372_vm3, 1.0, %v2890_v22  ;;  %v1719_v44 = vsel %vm372_vm3, 1.0, %v2889_v33  ;;  %v1708_v45 = vsel %vm372_vm3, %v2890_v22, 1.0  ;;  %v1707_v39 = vsel %vm372_vm3, %v2889_v33, 1.0 }
 0x877   : > { %v1725_v21 = vpack.c.bf16 %v1720_v57, %v1719_v44  ;;  %v1726_v41 = vpack.c.bf16 %v1722_v9, %v1721_v29  ;;  %v1713_v18 = vpack.c.bf16 %v1708_v45, %v1707_v39  ;;  %v1714_v59 = vpack.c.bf16 %v1710_v0, %v1709_v14 }
 0x879   : > { %2702 = vmatmul.mubr.msk.bf16.vlgmr.msra.gmra.mrb[36].mxu1 %vm3783_vm11, %v1711_v5  ;;  %v1825_v61 = vsel %vm3785_vm0, %v1725_v21, 0  ;;  %v1872_v43 = vsel %vm3788_vm15, %v1726_v41, 0 }
 0x87a   : > { %2706 = vmatpush3.bf16.xpose.msra.mxu1 %v1778_v42  ;;  %2712 = vmatpush3.bf16.xpose.msra.mxu0 %v1825_v61 }
 0x87b   : > { %2707 = vmatprep.mubr.msk.bf16.mxu1 %vm3130_vm2, %v3128_v15  ;;  %2717 = vmatprep.subr.bf16.mxu1 %v3128_v15 }
 0x87c   : > { %2723 = vmatprep.subr.bf16.mxu0 %v3128_v15 }
 0x881   : > { %2708 = vmatmul.mubr.msk.bf16.vlgmr.msra.gmra.mrb[40].mxu1 %vm3786_vm8, %v1712_v6  ;;  %2714 = vmatmul.mubr.msk.bf16.vlgmr.msra.gmra.mrb[44].mxu0 %vm3787_vm10, %v1713_v18 }
 0x882   : > { %2718 = vmatpush3.bf16.xpose.msra.mxu1 %v1872_v43  ;;  %2724 = vmatpush3.bf16.msra.mxu0 %v2039_v52 }
 0x883   : > { %2719 = vmatprep.mubr.msk.bf16.mxu1 %vm3130_vm2, %v3128_v15  ;;  %2729 = vmatprep.subr.bf16.mxu1 %v3128_v15 }
 0x884   : > { %2725 = vmatprep.mubr.msk.bf16.mxu0 %vm3130_vm2, %v3128_v15  ;;  %2735 = vmatprep.subr.bf16.mxu0 %v3128_v15 }
 0x889   : > { %2720 = vmatmul.mubr.msk.bf16.vlgmr.msra.gmra.mrb[44].mxu1 %vm3789_vm1, %v1714_v59 }
 0x88a   : > { %2730 = vmatpush3.bf16.msra.mxu1 %v2040_v50  ;;  %2731 = vmatprep.mubr.msk.bf16.mxu1 %vm3130_vm2, %v3128_v15 }
 0x88b   : > { %2741 = vmatprep.subr.bf16.mxu1 %v3128_v15 }
 0x94c   : > { %v1767_v46 = vpop.f32.mrb[36].mxu1 }
 0x94d   : > { %vm1915_vm11 = vcmp.gt.f32.partialorder %v1767_v46, 0.0  ;;  %v1923_v25 = vmul.f32 0.2, %v1767_v46  ;;  %v2703_v28 = vpop.f32.mrb[37].mxu1 }
 0x94e   : > { %v1770_v52 = vpop.f32.mrb[38].mxu1 }
 0x94f   : > { %vm1916_vm3 = vcmp.gt.f32.partialorder %v1770_v52, 0.0  ;;  %v1924_v60 = vmul.f32 0.2, %v1770_v52  ;;  %v2704_v8 = vpop.f32.mrb[39].mxu1  ;;  %v1931_v10 = vsel %vm1915_vm11, %v1767_v46, %v1923_v25 }
 0x950   : > { %v1939_v11 = vsel %vm236_vm6, %v1931_v10, -9e+15 }
 0x951   : > { %v1947_v26 = vsel %vm642_vm7, %v1939_v11, -inf  ;;  %v1932_v51 = vsel %vm1916_vm3, %v1770_v52, %v1924_v60 }
 0x952   : > { %1948 = vmax.xlane.f32.xlu0 %v1947_v26  ;;  %v1940_v50 = vsel %vm237_vm9, %v1932_v51, -9e+15 }
 0x953   : > { %v1950_v27 = vsel %vm642_vm7, %v1940_v50, -inf }
 0x954   : > { %v1814_v19 = vpop.f32.mrb[40].mxu1  ;;  %1951 = vmax.xlane.f32.xlu1 %v1950_v27  ;;  %v1861_v54 = vpop.f32.mrb[44].mxu0 }
 0x955   : > { %vm1917_vm4 = vcmp.gt.f32.partialorder %v1814_v19, 0.0  ;;  %v1925_v12 = vmul.f32 0.2, %v1814_v19  ;;  %vm1919_vm0 = vcmp.gt.f32.partialorder %v1861_v54, 0.0  ;;  %v1927_v16 = vmul.f32 0.2, %v1861_v54 }
 0x956   : > { %v2709_v17 = vpop.f32.mrb[41].mxu1  ;;  %v2715_v1 = vpop.f32.mrb[45].mxu0 }
 0x957   : > { %v1817_v47 = vpop.f32.mrb[42].mxu1  ;;  %v1864_v7 = vpop.f32.mrb[46].mxu0  ;;  %v1933_v20 = vsel %vm1917_vm4, %v1814_v19, %v1925_v12  ;;  %v1935_v38 = vsel %vm1919_vm0, %v1861_v54, %v1927_v16 }
 0x958   : > { %vm1918_vm6 = vcmp.gt.f32.partialorder %v1817_v47, 0.0  ;;  %v1926_v24 = vmul.f32 0.2, %v1817_v47  ;;  %vm1920_vm8 = vcmp.gt.f32.partialorder %v1864_v7, 0.0  ;;  %v1928_v49 = vmul.f32 0.2, %v1864_v7 }
 0x959   : > { %v2710_v40 = vpop.f32.mrb[43].mxu1  ;;  %v2716_v22 = vpop.f32.mrb[47].mxu0  ;;  %v1941_v33 = vsel %vm238_vm12, %v1933_v20, -9e+15  ;;  %v1943_v55 = vsel %vm240_vm13, %v1935_v38, -9e+15 }
 0x95a   : > { %v1953_v34 = vsel %vm642_vm7, %v1941_v33, -inf  ;;  %v1959_v23 = vsel %vm642_vm7, %v1943_v55, -inf  ;;  %v1934_v57 = vsel %vm1918_vm6, %v1817_v47, %v1926_v24  ;;  %v1936_v44 = vsel %vm1920_vm8, %v1864_v7, %v1928_v49 }
 0x95b   : > { %1954 = vmax.xlane.f32.xlu0 %v1953_v34  ;;  %1960 = vmax.xlane.f32.xlu1 %v1959_v23  ;;  %v1942_v31 = vsel %vm239_vm14, %v1934_v57, -9e+15  ;;  %v1944_v29 = vsel %vm241_vm5, %v1936_v44, -9e+15  ;;  %vm3790_vm13 = vcmp.gt.f32.partialorder %v3378_v35, 0.0  ;;  %vm3791_vm14 = vcmp.gt.f32.partialorder %v3385_v48, 0.0 }
 0x95c   : > { %v1908_v32 = vpop.f32.mrb[44].mxu1  ;;  %v1956_v42 = vsel %vm642_vm7, %v1942_v31, -inf  ;;  %v1962_v45 = vsel %vm642_vm7, %v1944_v29, -inf }
 0x95d   : > { %vm1921_vm9 = vcmp.gt.f32.partialorder %v1908_v32, 0.0  ;;  %v1929_v5 = vmul.f32 0.2, %v1908_v32  ;;  %v2721_v21 = vpop.f32.mrb[45].mxu1 }
 0x95e   : > { %v1911_v62 = vpop.f32.mrb[46].mxu1 }
 0x95f   : > { %vm1922_vm12 = vcmp.gt.f32.partialorder %v1911_v62, 0.0  ;;  %v1930_v63 = vmul.f32 0.2, %v1911_v62  ;;  %1957 = vmax.xlane.f32.xlu0 %v1956_v42  ;;  %v2722_v61 = vpop.f32.mrb[47].mxu1  ;;  %v1937_v9 = vsel %vm1921_vm9, %v1908_v32, %v1929_v5 }
 0x960   : > { %v1945_v3 = vsel %vm3790_vm13, %v1937_v9, -9e+15 }
 0x961   : > { %v1965_v37 = vsel %vm642_vm7, %v1945_v3, -inf  ;;  %v1938_v56 = vsel %vm1922_vm12, %v1911_v62, %v1930_v63 }
 0x962   : > { %1966 = vmax.xlane.f32.xlu1 %v1965_v37  ;;  %v1946_v39 = vsel %vm3791_vm14, %v1938_v56, -9e+15 }
 0x963   : > { %1963 = vmax.xlane.f32.xlu0 %v1962_v45  ;;  %v1968_v41 = vsel %vm642_vm7, %v1946_v39, -inf }
 0x967   : > { %1969 = vmax.xlane.f32.xlu0 %v1968_v41 }
 0x9df   : > { %v1949_v6 = vpop.xlane.xlu0 %1948 }
 0x9e0   : > { %v1971_v18 = vsub.f32 %v1939_v11, %v1949_v6 }
 0x9e1   : > { %v1952_v13 = vpop.xlane.xlu1 %1951 }
 0x9e2   : > { %v1979_v43 = vmul.f32 1.442695, %v1971_v18  ;;  %v1972_v0 = vsub.f32 %v1940_v50, %v1952_v13 }
 0x9e4   : > { %2992 = vpow2.f32 %v1979_v43  ;;  %v1981_v35 = vmul.f32 1.442695, %v1972_v0 }
 0x9e6   : > { %2994 = vpow2.f32 %v1981_v35 }
 0x9e8   : > { %v1955_v14 = vpop.xlane.xlu0 %1954  ;;  %v1961_v59 = vpop.xlane.xlu1 %1960 }
 0x9e9   : > { %v1973_v46 = vsub.f32 %v1941_v33, %v1955_v14  ;;  %v1975_v25 = vsub.f32 %v1943_v55, %v1961_v59 }
 0x9eb   : > { %v1983_v28 = vmul.f32 1.442695, %v1973_v46  ;;  %v1987_v52 = vmul.f32 1.442695, %v1975_v25 }
 0x9ec   : > { %v1958_v60 = vpop.xlane.xlu0 %1957 }
 0x9ed   : > { %2996 = vpow2.f32 %v1983_v28  ;;  %v1974_v48 = vsub.f32 %v1942_v31, %v1958_v60 }
 0x9ee   : > { %v2993_v8 = vpop.eup %2992  ;;  %2998 = vpow2.f32 %v1987_v52 }
 0x9ef   : > { %v1985_v10 = vmul.f32 1.442695, %v1974_v48  ;;  %v1967_v26 = vpop.xlane.xlu1 %1966  ;;  %v1995_v11 = vsel %vm642_vm7, %v2993_v8, 0.0 }
 0x9f0   : > { %v2995_v51 = vpop.eup %2994  ;;  %v1977_v50 = vsub.f32 %v1945_v3, %v1967_v26  ;;  %v1964_v27 = vpop.xlane.xlu0 %1963  ;;  %1996 = vadd.xlane.f32.xlu1 %v1995_v11 }
 0x9f1   : > { %3000 = vpow2.f32 %v1985_v10  ;;  %v1976_v19 = vsub.f32 %v1944_v29, %v1964_v27  ;;  %v1998_v54 = vsel %vm642_vm7, %v2995_v51, 0.0 }
 0x9f2   : > { %v1991_v12 = vmul.f32 1.442695, %v1977_v50  ;;  %1999 = vadd.xlane.f32.xlu0 %v1998_v54 }
 0x9f3   : > { %v1989_v16 = vmul.f32 1.442695, %v1976_v19 }
 0x9f4   : > { %3002 = vpow2.f32 %v1991_v12  ;;  %v1970_v17 = vpop.xlane.xlu0 %1969 }
 0x9f5   : > { %3004 = vpow2.f32 %v1989_v16  ;;  %v1978_v1 = vsub.f32 %v1946_v39, %v1970_v17 }
 0x9f7   : > { %v2997_v47 = vpop.eup %2996  ;;  %v1993_v7 = vmul.f32 1.442695, %v1978_v1 }
 0x9f8   : > { %v2001_v20 = vsel %vm642_vm7, %v2997_v47, 0.0  ;;  %v2999_v38 = vpop.eup %2998 }
 0x9f9   : > { %3006 = vpow2.f32 %v1993_v7  ;;  %2002 = vadd.xlane.f32.xlu1 %v2001_v20  ;;  %v2007_v49 = vsel %vm642_vm7, %v2999_v38, 0.0 }
 0x9fb   : > { %v3001_v24 = vpop.eup %3000 }
 0x9fc   : > { %v2004_v40 = vsel %vm642_vm7, %v3001_v24, 0.0 }
 0x9fd   : > { %2008 = vadd.xlane.f32.xlu1 %v2007_v49  ;;  %2005 = vadd.xlane.f32.xlu0 %v2004_v40 }
 0x9fe   : > { %v3003_v22 = vpop.eup %3002 }
 0x9ff   : > { %v3005_v33 = vpop.eup %3004  ;;  %v2013_v55 = vsel %vm642_vm7, %v3003_v22, 0.0 }
 0xa00   : > { %v2010_v34 = vsel %vm642_vm7, %v3005_v33, 0.0 }
 0xa01   : > { %2014 = vadd.xlane.f32.xlu1 %v2013_v55  ;;  %2011 = vadd.xlane.f32.xlu0 %v2010_v34 }
 0xa03   : > { %v3007_v23 = vpop.eup %3006 }
 0xa04   : > { %v2016_v57 = vsel %vm642_vm7, %v3007_v23, 0.0 }
 0xa05   : > { %2017 = vadd.xlane.f32.xlu0 %v2016_v57 }
 0xa7d   : > { %v1997_v31 = vpop.xlane.xlu1 %1996 }
 0xa7e   : > { %3008 = vrcp.f32 %v1997_v31 }
 0xa7f   : > { %v2000_v32 = vpop.xlane.xlu0 %1999 }
 0xa80   : > { %3010 = vrcp.f32 %v2000_v32 }
 0xa86   : > { %v2003_v44 = vpop.xlane.xlu1 %2002 }
 0xa87   : > { %3012 = vrcp.f32 %v2003_v44 }
 0xa88   : > { %v3009_v5 = vpop.eup %3008 }
 0xa89   : > { %v2027_v63 = vmul.f32 %v3009_v5, %v2993_v8 }
 0xa8a   : > { %v3011_v21 = vpop.eup %3010  ;;  %v2009_v62 = vpop.xlane.xlu1 %2008 }
 0xa8b   : > { %v2006_v42 = vpop.xlane.xlu0 %2005  ;;  %v2028_v61 = vmul.f32 %v3011_v21, %v2995_v51 }
 0xa8c   : > { %3014 = vrcp.f32 %v2006_v42 }
 0xa8d   : > { %v2035_v9 = vpack.c.bf16 %v2028_v61, %v2027_v63  ;;  %3016 = vrcp.f32 %v2009_v62 }
 0xa8e   : > { %v2015_v29 = vpop.xlane.xlu1 %2014 }
 0xa8f   : > { %v2012_v3 = vpop.xlane.xlu0 %2011  ;;  %2726 = vmatmul.mubr.msk.bf16.vlgmr.msra.gmra.mrb[48].mxu0 %vm642_vm7, %v2035_v9 }
 0xa90   : > { %3018 = vrcp.f32 %v2012_v3  ;;  %2736 = vmatpush3.bf16.msra.mxu0 %v2041_v30  ;;  %2737 = vmatprep.mubr.msk.bf16.mxu0 %vm3130_vm2, %v3128_v15 }
 0xa91   : > { %3020 = vrcp.f32 %v2015_v29  ;;  %v3013_v56 = vpop.eup %3012 }
 0xa92   : > { %v2029_v39 = vmul.f32 %v3013_v56, %v2997_v47 }
 0xa93   : > { %v2018_v37 = vpop.xlane.xlu0 %2017 }
 0xa94   : > { %3022 = vrcp.f32 %v2018_v37 }
 0xa96   : > { %v3015_v45 = vpop.eup %3014 }
 0xa97   : > { %v2030_v41 = vmul.f32 %v3015_v45, %v3001_v24  ;;  %v3017_v6 = vpop.eup %3016 }
 0xa98   : > { %v2031_v0 = vmul.f32 %v3017_v6, %v2999_v38 }
 0xa99   : > { %v2036_v18 = vpack.c.bf16 %v2030_v41, %v2029_v39 }
 0xa9a   : > { %v3019_v13 = vpop.eup %3018 }
 0xa9b   : > { %v3021_v43 = vpop.eup %3020  ;;  %v2032_v35 = vmul.f32 %v3019_v13, %v3005_v33  ;;  %2732 = vmatmul.mubr.msk.bf16.vlgmr.msra.gmra.mrb[48].mxu1 %vm642_vm7, %v2036_v18 }
 0xa9c   : > { %2742 = vmatpush3.bf16.msra.mxu1 %v2042_v4  ;;  %2743 = vmatprep.mubr.msk.bf16.mxu1 %vm3130_vm2, %v3128_v15  ;;  %v2033_v30 = vmul.f32 %v3021_v43, %v3003_v22 }
 0xa9d   : > { %v2037_v2 = vpack.c.bf16 %v2032_v35, %v2031_v0 }
 0xa9e   : > { %v3023_v36 = vpop.eup %3022 }
 0xa9f   : > { %v2034_v14 = vmul.f32 %v3023_v36, %v3007_v23  ;;  %2738 = vmatmul.mubr.msk.bf16.vlgmr.msra.gmra.mrb[52].mxu0 %vm642_vm7, %v2037_v2 }
 0xaa1   : > { %v2038_v59 = vpack.c.bf16 %v2034_v14, %v2033_v30 }
 0xaa3   : > { %2744 = vmatmul.mubr.msk.bf16.vlgmr.msra.gmra.mrb[52].mxu1 %vm642_vm7, %v2038_v59 }
 0xb62   : > { %v2080_v46 = vpop.f32.mrb[48].mxu0 }
 0xb63   : > { %v2227_v25 = vmul.f32 1.442695, %v2080_v46  ;;  %v2727_v28 = vpop.f32.mrb[49].mxu0  ;;  %vm2219_vm2 = vcmp.gt.f32.partialorder %v2080_v46, 0.0 }
 0xb64   : > { %v2083_v52 = vpop.f32.mrb[50].mxu0 }
 0xb65   : > { %3024 = vpow2.f32 %v2227_v25  ;;  %v2229_v60 = vmul.f32 1.442695, %v2083_v52  ;;  %v2728_v53 = vpop.f32.mrb[51].mxu0  ;;  %vm2220_vm7 = vcmp.gt.f32.partialorder %v2083_v52, 0.0 }
 0xb67   : > { %3026 = vpow2.f32 %v2229_v60 }
 0xb6e   : > { %v2124_v58 = vpop.f32.mrb[48].mxu1 }
 0xb6f   : > { %v3025_v4 = vpop.eup %3024  ;;  %v2231_v15 = vmul.f32 1.442695, %v2124_v58  ;;  %v2733_v48 = vpop.f32.mrb[49].mxu1  ;;  %vm2221_vm5 = vcmp.gt.f32.partialorder %v2124_v58, 0.0 }
 0xb70   : > { %v2507_v8 = vadd.f32 -1.0, %v3025_v4  ;;  %v2127_v10 = vpop.f32.mrb[50].mxu1 }
 0xb71   : > { %v3027_v26 = vpop.eup %3026  ;;  %3028 = vpow2.f32 %v2231_v15  ;;  %v2233_v11 = vmul.f32 1.442695, %v2127_v10  ;;  %v2734_v51 = vpop.f32.mrb[51].mxu1  ;;  %vm2222_vm10 = vcmp.gt.f32.partialorder %v2127_v10, 0.0 }
 0xb72   : > { %v2508_v50 = vadd.f32 -1.0, %v3027_v26  ;;  %v2168_v27 = vpop.f32.mrb[52].mxu0  ;;  %v2251_v12 = vsel %vm2219_vm2, %v2080_v46, %v2507_v8 }
 0xb73   : > { %3030 = vpow2.f32 %v2233_v11  ;;  %v2235_v19 = vmul.f32 1.442695, %v2168_v27  ;;  %v2739_v54 = vpop.f32.mrb[53].mxu0  ;;  %vm2223_vm15 = vcmp.gt.f32.partialorder %v2168_v27, 0.0 }
 0xb74   : > { %v2252_v16 = vsel %vm2220_vm7, %v2083_v52, %v2508_v50  ;;  %v2171_v17 = vpop.f32.mrb[54].mxu0 }
 0xb75   : > { %v2259_v1 = vmax.f32 %v2251_v12, %v2252_v16  ;;  %3032 = vpow2.f32 %v2235_v19  ;;  %v2237_v47 = vmul.f32 1.442695, %v2171_v17  ;;  %v2740_v7 = vpop.f32.mrb[55].mxu0  ;;  %vm2224_vm1 = vcmp.gt.f32.partialorder %v2171_v17, 0.0 }
 0xb76   : > { %v2212_v20 = vpop.f32.mrb[52].mxu1 }
 0xb77   : > { %v2260_v38 = vrot.slane %v2259_v1, 4  ;;  %3034 = vpow2.f32 %v2237_v47  ;;  %v2239_v24 = vmul.f32 1.442695, %v2212_v20  ;;  %v2745_v49 = vpop.f32.mrb[53].mxu1  ;;  %vm2225_vm11 = vcmp.gt.f32.partialorder %v2212_v20, 0.0 }
 0xb78   : > { %v2215_v40 = vpop.f32.mrb[54].mxu1 }
 0xb79   : > { %v2261_v22 = vmax.f32 %v2259_v1, %v2260_v38  ;;  %3036 = vpow2.f32 %v2239_v24  ;;  %v2241_v33 = vmul.f32 1.442695, %v2215_v40  ;;  %v2746_v55 = vpop.f32.mrb[55].mxu1  ;;  %vm2226_vm3 = vcmp.gt.f32.partialorder %v2215_v40, 0.0 }
 0xb7b   : > { %v3029_v34 = vpop.eup %3028  ;;  %v2262_v23 = vrot.slane %v2261_v22, 2  ;;  %3038 = vpow2.f32 %v2241_v33 }
 0xb7c   : > { %v2509_v57 = vadd.f32 -1.0, %v3029_v34 }
 0xb7d   : > { %v3031_v31 = vpop.eup %3030  ;;  %v2263_v32 = vmax.f32 %v2261_v22, %v2262_v23 }
 0xb7e   : > { %v2510_v44 = vadd.f32 -1.0, %v3031_v31  ;;  %v2253_v62 = vsel %vm2221_vm5, %v2124_v58, %v2509_v57 }
 0xb7f   : > { %v3033_v5 = vpop.eup %3032  ;;  %v2264_v21 = vrot.slane %v2263_v32, 1 }
 0xb80   : > { %v2254_v42 = vsel %vm2222_vm10, %v2127_v10, %v2510_v44  ;;  %v2511_v63 = vadd.f32 -1.0, %v3033_v5 }
 0xb81   : > { %v3035_v61 = vpop.eup %3034  ;;  %v2265_v9 = vmax.f32 %v2263_v32, %v2264_v21  ;;  %v2266_v29 = vmax.f32 %v2253_v62, %v2254_v42 }
 0xb82   : > { %v2512_v3 = vadd.f32 -1.0, %v3035_v61  ;;  %v2255_v41 = vsel %vm2223_vm15, %v2168_v27, %v2511_v63 }
 0xb83   : > { %v3037_v37 = vpop.eup %3036  ;;  %v2287_v56 = vsub.f32 %v2251_v12, %v2265_v9  ;;  %v2288_v45 = vsub.f32 %v2252_v16, %v2265_v9  ;;  %v2267_v39 = vrot.slane %v2266_v29, 4 }
 0xb84   : > { %v2256_v6 = vsel %vm2224_vm1, %v2171_v17, %v2512_v3  ;;  %v2513_v18 = vadd.f32 -1.0, %v3037_v37 }
 0xb85   : > { %v3039_v13 = vpop.eup %3038  ;;  %v2295_v43 = vmul.f32 1.442695, %v2287_v56  ;;  %v2297_v0 = vmul.f32 1.442695, %v2288_v45  ;;  %v2268_v35 = vmax.f32 %v2266_v29, %v2267_v39  ;;  %v2273_v36 = vmax.f32 %v2255_v41, %v2256_v6 }
 0xb86   : > { %v2514_v2 = vadd.f32 -1.0, %v3039_v13  ;;  %v2257_v59 = vsel %vm2225_vm11, %v2212_v20, %v2513_v18 }
 0xb87   : > { %3040 = vpow2.f32 %v2295_v43  ;;  %v2269_v30 = vrot.slane %v2268_v35, 2  ;;  %v2274_v14 = vrot.slane %v2273_v36, 4 }
 0xb88   : > { %3042 = vpow2.f32 %v2297_v0  ;;  %v2258_v46 = vsel %vm2226_vm3, %v2215_v40, %v2514_v2 }
 0xb89   : > { %v2270_v25 = vmax.f32 %v2268_v35, %v2269_v30  ;;  %v2275_v28 = vmax.f32 %v2273_v36, %v2274_v14  ;;  %v2280_v52 = vmax.f32 %v2257_v59, %v2258_v46 }
 0xb8b   : > { %v2271_v60 = vrot.slane %v2270_v25, 1  ;;  %v2276_v53 = vrot.slane %v2275_v28, 2  ;;  %v2281_v58 = vrot.slane %v2280_v52, 4 }
 0xb8d   : > { %v2272_v4 = vmax.f32 %v2270_v25, %v2271_v60  ;;  %v2277_v15 = vmax.f32 %v2275_v28, %v2276_v53  ;;  %v2282_v48 = vmax.f32 %v2280_v52, %v2281_v58 }
 0xb8f   : > { %v2289_v8 = vsub.f32 %v2253_v62, %v2272_v4  ;;  %v2290_v10 = vsub.f32 %v2254_v42, %v2272_v4  ;;  %v2278_v26 = vrot.slane %v2277_v15, 1  ;;  %v2283_v11 = vrot.slane %v2282_v48, 2 }
 0xb91   : > { %v3041_v51 = vpop.eup %3040  ;;  %v2299_v50 = vmul.f32 1.442695, %v2289_v8  ;;  %v2301_v27 = vmul.f32 1.442695, %v2290_v10  ;;  %v2279_v19 = vmax.f32 %v2277_v15, %v2278_v26  ;;  %v2284_v54 = vmax.f32 %v2282_v48, %v2283_v11 }
 0xb92   : > { %v3043_v12 = vpop.eup %3042 }
 0xb93   : > { %v2311_v16 = vadd.f32 %v3043_v12, %v3041_v51  ;;  %3044 = vpow2.f32 %v2299_v50  ;;  %v2291_v17 = vsub.f32 %v2255_v41, %v2279_v19  ;;  %v2292_v1 = vsub.f32 %v2256_v6, %v2279_v19 }
 0xb94   : > { %3046 = vpow2.f32 %v2301_v27  ;;  %v2285_v47 = vrot.slane %v2284_v54, 1 }
 0xb95   : > { %v2312_v7 = vrot.slane %v2311_v16, 4  ;;  %v2303_v20 = vmul.f32 1.442695, %v2291_v17  ;;  %v2305_v38 = vmul.f32 1.442695, %v2292_v1 }
 0xb96   : > { %v2286_v24 = vmax.f32 %v2284_v54, %v2285_v47 }
 0xb97   : > { %v2313_v49 = vadd.f32 %v2312_v7, %v2311_v16  ;;  %3048 = vpow2.f32 %v2303_v20 }
 0xb98   : > { %3050 = vpow2.f32 %v2305_v38  ;;  %v2293_v40 = vsub.f32 %v2257_v59, %v2286_v24  ;;  %v2294_v22 = vsub.f32 %v2258_v46, %v2286_v24 }
 0xb99   : > { %v2314_v33 = vrot.slane %v2313_v49, 2 }
 0xb9a   : > { %v2307_v55 = vmul.f32 1.442695, %v2293_v40  ;;  %v2309_v34 = vmul.f32 1.442695, %v2294_v22 }
 0xb9b   : > { %v2315_v23 = vadd.f32 %v2314_v33, %v2313_v49 }
 0xb9c   : > { %3052 = vpow2.f32 %v2307_v55 }
 0xb9d   : > { %v3045_v57 = vpop.eup %3044  ;;  %v2316_v31 = vrot.slane %v2315_v23, 1  ;;  %3054 = vpow2.f32 %v2309_v34 }
 0xb9e   : > { %v3047_v32 = vpop.eup %3046 }
 0xb9f   : > { %v2317_v44 = vadd.f32 %v2316_v31, %v2315_v23  ;;  %v2318_v5 = vadd.f32 %v3047_v32, %v3045_v57 }
 0xba1   : > { %v3049_v21 = vpop.eup %3048  ;;  %3056 = vrcp.f32 %v2317_v44  ;;  %v2319_v62 = vrot.slane %v2318_v5, 4 }
 0xba2   : > { %v3051_v42 = vpop.eup %3050 }
 0xba3   : > { %v2320_v63 = vadd.f32 %v2319_v62, %v2318_v5  ;;  %v2325_v61 = vadd.f32 %v3051_v42, %v3049_v21 }
 0xba5   : > { %v2321_v9 = vrot.slane %v2320_v63, 2  ;;  %v2326_v29 = vrot.slane %v2325_v61, 4 }
 0xba6   : > { %v3053_v3 = vpop.eup %3052 }
 0xba7   : > { %v3055_v37 = vpop.eup %3054  ;;  %v2322_v56 = vadd.f32 %v2321_v9, %v2320_v63  ;;  %v2327_v45 = vadd.f32 %v2326_v29, %v2325_v61 }
 0xba8   : > { %v2332_v39 = vadd.f32 %v3055_v37, %v3053_v3 }
 0xba9   : > { %v2323_v41 = vrot.slane %v2322_v56, 1  ;;  %v2328_v6 = vrot.slane %v2327_v45, 2 }
 0xbaa   : > { %v2333_v18 = vrot.slane %v2332_v39, 4 }
 0xbab   : > { %v3057_v13 = vpop.eup %3056  ;;  %v2324_v43 = vadd.f32 %v2323_v41, %v2322_v56  ;;  %v2329_v0 = vadd.f32 %v2328_v6, %v2327_v45 }
 0xbac   : > { %v2343_v35 = vmul.f32 %v3057_v13, %v3041_v51  ;;  %v2344_v36 = vmul.f32 %v3057_v13, %v3043_v12  ;;  %v2334_v2 = vadd.f32 %v2333_v18, %v2332_v39 }
 0xbad   : > { %3058 = vrcp.f32 %v2324_v43  ;;  %v2330_v30 = vrot.slane %v2329_v0, 1 }
 0xbae   : > { %2351 = vst [vmem:[%s211_s6] sm:$0xff] %v2343_v35  ;;  %2352 = vst [vmem:[%s211_s6 + $0x8] sm:$0xff] %v2344_v36  ;;  %v2335_v14 = vrot.slane %v2334_v2, 2 }
 0xbaf   : > { %v2331_v59 = vadd.f32 %v2330_v30, %v2329_v0 }
 0xbb0   : > { %v2336_v46 = vadd.f32 %v2335_v14, %v2334_v2 }
 0xbb1   : > { %3060 = vrcp.f32 %v2331_v59 }
 0xbb2   : > { %v2337_v25 = vrot.slane %v2336_v46, 1 }
 0xbb4   : > { %v2338_v28 = vadd.f32 %v2337_v25, %v2336_v46 }
 0xbb6   : > { %3062 = vrcp.f32 %v2338_v28 }
 0xbb7   : > { %v3059_v52 = vpop.eup %3058 }
 0xbb8   : > { %v2345_v60 = vmul.f32 %v3059_v52, %v3045_v57  ;;  %v2346_v53 = vmul.f32 %v3059_v52, %v3047_v32 }
 0xbba   : > { %2353 = vst [vmem:[%s211_s6 + $0x10] sm:$0xff] %v2345_v60  ;;  %2354 = vst [vmem:[%s211_s6 + $0x18] sm:$0xff] %v2346_v53 }
 0xbbb   : > { %v3061_v58 = vpop.eup %3060 }
 0xbbc   : > { %v2347_v4 = vmul.f32 %v3061_v58, %v3049_v21  ;;  %v2348_v15 = vmul.f32 %v3061_v58, %v3051_v42 }
 0xbbe   : > { %2355 = vst [vmem:[%s211_s6 + $0x20] sm:$0xff] %v2347_v4  ;;  %2356 = vst [vmem:[%s211_s6 + $0x28] sm:$0xff] %v2348_v15 }
 0xbc0   : > { %v3063_v48 = vpop.eup %3062 }
 0xbc1   : > { %v2349_v8 = vmul.f32 %v3063_v48, %v3053_v3  ;;  %v2350_v10 = vmul.f32 %v3063_v48, %v3055_v37 }
 0xbc3   : > { %2357 = vst [vmem:[%s211_s6 + $0x30] sm:$0xff] %v2349_v8  ;;  %2358 = vst [vmem:[%s211_s6 + $0x38] sm:$0xff] %v2350_v10 }
 0xbc4   : > { %3077 = shalt.err (!%p3074_p3)
}
 0xbc5   : > { %s3078_s22 = scalar_lea.hbm %s3724_s11, 1024  ;;  %s3082_s29 = scalar_lea.hbm %s3776_s4, 2048 }
 0xbc6   : > { %p3079_p4 = scmp.ne.s32.totalorder %s3724_s11, %s3078_s22  ;;  %p3083_p9 = scmp.lt.u32.totalorder %s3724_s11, %s3776_s4 }
 0xbc7   : > { %p3084_p10 = scmp.lt.u32.totalorder %s3082_s29, %s3078_s22  ;;  %p3086_p12 = scmp.lt.u32.totalorder %s3078_s22, %s3724_s11 }
 0xbc8   : > { %p3080_p7 = pnand %p3079_p4, %p3201_p5 }
 0xbc9   : > { %p3085_p11 = por %p3084_p10, %p3083_p9 }
 0xbca   : > { %p3081_p8 = pneg %p3080_p7 }
 0xbcb   : > { %p3087_p13 = por %p3086_p12, %p3085_p11 }
 0xbcd   : > { %p3088_p0 = pnand %p3087_p13, %p3081_p8 }
 0xbcf   : > { %3091 = shalt.err (!%p3088_p0)
}
 0xbd0   : > { %s3137_s6 = smov 128  }
 0xbd1   : > { %2748 = dma.vmem_to_hbm [thread:$0]  (%p3201_p5), %s3726_s8, 1024, %s3724_s11, %s3730_s19, %s3137_s6, %s3137_s6, %s3134_s28  }
 0xbd2 PF: > { %p2754_p1 = scmp.ge.s32.totalorder %s3126_s18, 2  ;;  %s2389_s7 = sand.u32 1, %s3114_s15  }
 0xbd3   : > { %s2390_s9 = scalar_lea.sflag [#allocation3], %s2389_s7 }
 0xbd4   : > { %p2751_p2 = pnand %p2754_p1, %p3205_p6 }
 0xbd6   : > { %3109 = dma.done.wait (!%p2751_p2), %s2390_s9, 1024  }
 0xbd7   : > { %3111 = vsyncadd (!%p2751_p2), %s2390_s9, 4294966272  ;;  %p14_p3 = scmp.ge.s32.totalorder %s3188_s21, 4   ;;  %s3792_s15 = smov %s3118_s16 }
 0xbd8   : > { %s3793_s16 = smov %s3122_s17  ;;  %s3794_s17 = smov %s3199_s24 }
 0xbd9   : > { %s3795_s18 = smov %s3188_s21  ;;  %16 = sbr.rel (!%p14_p3) target bundleno = 3 (0x3), region = 74 }
 0xbe0   :  { %2395 = vsyncpa [#allocation3], 1 }
 0xbe1   :  { %2397 = vsyncpa [#allocation3 + $0x1], 1 }

</bundles_post_ra>
